<compile_context>
chip_gen: v5e
topology: v5e:2x2
jax: 0.10.0
libtpu: 0.0.40
codegen_flags: <defaults>
</compile_context>

<pallas_src>
import functools
import math

import jax
import jax.numpy as jnp
from jax.experimental import pallas as pl
from jax.experimental.pallas import tpu as pltpu


LANE = 128              # lane-axis padding target for feature dims
NODE_TILE_BASE = 256    # node-axis padding granularity (mult of 8 and 128)
MAX_TM = 1024           # max dst-node ("parallel") tile
MAX_TK = 1024           # max src-node ("arbitrary" reduction) tile


def _round_up(v, m):
    return ((v + m - 1) // m) * m


def _pick_tile(n_pad, max_tile, base=NODE_TILE_BASE):
    """Largest multiple of `base` that is <= max_tile and divides n_pad."""
    t = max(base, min(max_tile, n_pad))
    t -= t % base
    while n_pad % t:
        t -= base
    return t


def _vmem_cap_bytes():
    """Device-aware scoped-VMEM cap (v7x has 64 MiB/TC; v5e/v6e have 128)."""
    try:
        kind = jax.devices()[0].device_kind.lower()
    except Exception:  # pragma: no cover - defensive
        kind = ""
    if "v7" in kind or "7x" in kind:
        return 48 * 2 ** 20
    return 96 * 2 ** 20


# ----------------------------------------------------------------------------
# Pallas kernel: one (dst-tile, src-tile) grid step of a GCNConvDiagEnhance
# layer.  Grid = (N_pad//tm "parallel", N_pad//tk "arbitrary" reduction).
# ----------------------------------------------------------------------------
def _gcn_layer_kernel(a_ref, xs_ref, ms_ref, hx_ref, ws_ref, wx_ref,
                      o_ref, acc_ref, *, f_out, apply_relu):
    k = pl.program_id(1)

    @pl.when(k == 0)
    def _():
        acc_ref[...] = jnp.zeros_like(acc_ref)

    # support += A[dst-tile, src-tile] @ x[src-tile]   (bf16 MXU, f32 accum)
    acc_ref[...] += jnp.dot(a_ref[...], xs_ref[...],
                            preferred_element_type=jnp.float32)

    @pl.when(k == pl.num_programs(1) - 1)
    def _():
        # dropout of the support-half of cat([support, x]); 1/keep_prob is
        # already folded into the weights; the x-half (hx_ref) was masked and
        # cast to bf16 in the wrapper.
        hs = (acc_ref[...] * ms_ref[...].astype(jnp.float32)
              ).astype(jnp.bfloat16)

        # cat + matmul split algebraically: [hs, hx] @ [Ws; Wx]
        out = (jnp.dot(hs, ws_ref[...], preferred_element_type=jnp.float32)
               + jnp.dot(hx_ref[...], wx_ref[...],
                         preferred_element_type=jnp.float32))

        # F.layer_norm(out, [out_channels]) over the real channels only.
        # Padded output lanes are exactly 0 (padded weight columns are 0), so
        # the raw sum already equals the sum over real channels.
        inv_n = 1.0 / float(f_out)
        mean = jnp.sum(out, axis=-1, keepdims=True) * inv_n
        lane = jax.lax.broadcasted_iota(jnp.int32, out.shape, 1)
        centered = jnp.where(lane < f_out, out - mean, 0.0)
        var = jnp.sum(centered * centered, axis=-1, keepdims=True) * inv_n
        y = centered * jax.lax.rsqrt(var + 1e-5)
        if apply_relu:
            y = jnp.maximum(y, 0.0)
        # padded lanes of `centered` are 0, so padded output lanes stay 0.
        o_ref[...] = y.astype(o_ref.dtype)


def gcn_diag_enhance_layer(a_pad, h_pad, w, mask_s, hx_pad, *,
                           f_out_real, apply_relu, out_dtype,
                           dropout_scale):
    """One GCNConvDiagEnhance layer via a tiled pallas_call.

    a_pad:   [N_pad, N_pad]     bf16 normalized aggregation matrix (padded).
    h_pad:   [N_pad, F_in_pad]  bf16 node features (lane-padded).
    w:       [2*F_in_real, F_out_real] f32 layer weight (unpadded).
    mask_s:  [N_pad, F_in_pad]  bf16 {0,1} keep-mask for the support half.
    hx_pad:  [N_pad, F_in_pad]  bf16 pre-masked x half of the concat.
    """
    n_pad, f_in_pad = h_pad.shape
    f_in_real = w.shape[0] // 2
    f_out_pad = _round_up(f_out_real, LANE)

    # Pad weights to lane-dense shapes, fold the dropout 1/keep rescale in,
    # split W = [Ws; Wx] so the concat never materializes, cast to bf16 (MXU).
    w_s = jnp.zeros((f_in_pad, f_out_pad), jnp.float32)
    w_s = w_s.at[:f_in_real, :f_out_real].set(w[:f_in_real] * dropout_scale)
    w_x = jnp.zeros((f_in_pad, f_out_pad), jnp.float32)
    w_x = w_x.at[:f_in_real, :f_out_real].set(w[f_in_real:] * dropout_scale)
    w_s = w_s.astype(jnp.bfloat16)
    w_x = w_x.astype(jnp.bfloat16)

    # Tile choice: big tiles to amortize per-step overhead; cap tm so the
    # "parallel" dst axis has >= 2 tiles when possible (v7x has 2 TCs).
    tm = _pick_tile(n_pad, min(MAX_TM, max(NODE_TILE_BASE, n_pad // 2)))
    tk = _pick_tile(n_pad, MAX_TK)
    grid = (n_pad // tm, n_pad // tk)

    kernel = functools.partial(_gcn_layer_kernel,
                               f_out=f_out_real, apply_relu=apply_relu)

    out_itemsize = jnp.dtype(out_dtype).itemsize
    flops = 2 * n_pad * n_pad * f_in_pad + 4 * n_pad * f_in_pad * f_out_pad
    bytes_accessed = (a_pad.size * 2                       # A_agg, read once
                      + grid[0] * n_pad * f_in_pad * 2     # x src per dst tile
                      + 2 * n_pad * f_in_pad * 2           # mask_s + hx (bf16)
                      + 2 * f_in_pad * f_out_pad * 2       # Ws, Wx
                      + n_pad * f_out_pad * out_itemsize)  # output

    # Double-buffered working set + f32 accumulator + headroom, under a
    # device-aware cap (v7x: 64 MiB physical VMEM per TC).
    need = (2 * tm * tk * 2                       # A tile x2 (bf16)
            + 2 * tk * f_in_pad * 2               # x src tile x2
            + 2 * 2 * tm * f_in_pad * 2           # mask_s + hx tiles x2
            + 2 * 2 * f_in_pad * f_out_pad * 2    # Ws, Wx x2
            + tm * f_in_pad * 4                   # f32 accumulator scratch
            + 2 * tm * f_out_pad * out_itemsize)  # output tile x2
    vmem_limit = int(min(_vmem_cap_bytes(),
                         max(32 * 2 ** 20, need + (8 << 20))))

    return pl.pallas_call(
        kernel,
        out_shape=jax.ShapeDtypeStruct((n_pad, f_out_pad), out_dtype),
        grid=grid,
        in_specs=[
            pl.BlockSpec((tm, tk), lambda i, k: (i, k)),               # A_agg
            pl.BlockSpec((tk, f_in_pad), lambda i, k: (k, 0)),         # x src
            pl.BlockSpec((tm, f_in_pad), lambda i, k: (i, 0)),         # mask_s
            pl.BlockSpec((tm, f_in_pad), lambda i, k: (i, 0)),         # hx
            pl.BlockSpec((f_in_pad, f_out_pad), lambda i, k: (0, 0)),  # Ws
            pl.BlockSpec((f_in_pad, f_out_pad), lambda i, k: (0, 0)),  # Wx
        ],
        out_specs=pl.BlockSpec((tm, f_out_pad), lambda i, k: (i, 0)),
        scratch_shapes=[pltpu.VMEM((tm, f_in_pad), jnp.float32)],
        compiler_params=pltpu.CompilerParams(
            dimension_semantics=("parallel", "arbitrary"),
            vmem_limit_bytes=vmem_limit),
        cost_estimate=pl.CostEstimate(flops=flops,
                                      transcendentals=n_pad,
                                      bytes_accessed=bytes_accessed),
    )(a_pad, h_pad, mask_s, hx_pad, w_s, w_x)


# ----------------------------------------------------------------------------
# Glue (plain JAX): diag_enhance_norm as a dense aggregation matrix.
# ----------------------------------------------------------------------------
def diag_enhance_norm_dense(edge_index, num_nodes, edge_weight=None,
                            improved=False, diag_lambda=1.0,
                            dtype=jnp.float32):
    """Dense equivalent of GCNConvDiagEnhance.diag_enhance_norm + propagate.

    Returns A_agg such that support = A_agg @ x reproduces the scatter_add of
    norm[e] * x[row[e]] into node col[e].
    """
    row, col = edge_index[0], edge_index[1]
    num_edges = row.shape[0]
    if edge_weight is None:
        edge_weight = jnp.ones((num_edges,), dtype)
    fill_value = 2.0 if improved else 1.0

    self_mask = row == col
    # non-self-loop edges (add_remaining_self_loops drops existing self loops)
    a = jnp.zeros((num_nodes, num_nodes), dtype)
    a = a.at[row, col].add(jnp.where(self_mask, 0.0, edge_weight))
    # one self loop per node: existing self-loop weight if present, else fill
    loop_w = jnp.full((num_nodes,), fill_value, dtype)
    loop_w = loop_w.at[jnp.where(self_mask, row, num_nodes)].set(
        jnp.where(self_mask, edge_weight, 0.0), mode="drop")
    a = a + jnp.diag(loop_w)

    deg = a.sum(axis=1)                                 # scatter_add over row
    dinv = jnp.where(deg > 0, jax.lax.rsqrt(deg), 0.0)  # deg^-0.5, inf -> 0
    a_norm = dinv[:, None] * a * dinv[None, :]
    # diag enhancement: norm + diag_lambda * (norm restricted to self loops)
    a_hat = a_norm + diag_lambda * jnp.diag(jnp.diag(a_norm))
    # messages flow source(row) -> target(col), aggregated at target:
    return a_hat.T


# ----------------------------------------------------------------------------
# Net: parameter init (glorot) + forward
# ----------------------------------------------------------------------------
def init_net_params(key, in_channels, hidden_channels, out_channels,
                    num_layers):
    dims = [(2 * in_channels, hidden_channels)]
    for _ in range(num_layers - 2):
        dims.append((2 * hidden_channels, hidden_channels))
    dims.append((2 * hidden_channels, out_channels))
    params = []
    for fi, fo in dims:
        key, sub = jax.random.split(key)
        limit = math.sqrt(6.0 / (fi + fo))        # glorot uniform
        params.append(jax.random.uniform(sub, (fi, fo), jnp.float32,
                                         -limit, limit))
    return params


def net_forward(x, edge_index, params, dropout_key,
                diag_lambda=1.0, keep_prob=0.8, training=True):
    n, f_in = x.shape
    out_channels = params[-1].shape[1]

    # Dense normalized aggregation matrix, padded + cast to bf16 ONCE.
    n_pad = _round_up(n, NODE_TILE_BASE)
    a = diag_enhance_norm_dense(edge_index, n, diag_lambda=diag_lambda)
    a_pad = jnp.zeros((n_pad, n_pad), jnp.float32).at[:n, :n].set(a)
    a_pad = a_pad.astype(jnp.bfloat16)

    # Lane-pad node features; intermediates stay bf16 + lane-padded.
    f_in_pad = _round_up(f_in, LANE)
    h = jnp.zeros((n_pad, f_in_pad), jnp.bfloat16)
    h = h.at[:n, :f_in].set(x.astype(jnp.bfloat16))

    num_layers = len(params)
    keys = jax.random.split(dropout_key, 2 * num_layers)
    for i, w in enumerate(params):
        last = i == num_layers - 1
        if training:
            # dropout keep-masks ({0,1}, exact in bf16) from jax.random (the
            # TPU hardware PRNG has no CPU/interpret lowering).  The x-half of
            # the concat is masked here so the kernel streams a single bf16
            # input instead of (x_dst + f32 mask).
            mask_s = jax.random.bernoulli(keys[2 * i], keep_prob,
                                          h.shape).astype(jnp.bfloat16)
            mask_x = jax.random.bernoulli(keys[2 * i + 1], keep_prob,
                                          h.shape).astype(jnp.bfloat16)
            hx = h * mask_x
            scale = 1.0 / keep_prob
        else:
            mask_s = jnp.ones(h.shape, jnp.bfloat16)
            hx = h
            scale = 1.0
        h = gcn_diag_enhance_layer(
            a_pad, h, w, mask_s, hx,
            f_out_real=w.shape[1],
            apply_relu=not last,
            out_dtype=jnp.float32 if last else jnp.bfloat16,
            dropout_scale=scale)
    return h[:n, :out_channels]


# ----------------------------------------------------------------------------
if __name__ == "__main__":
    key = jax.random.PRNGKey(0)

    num_nodes = 32
    in_channels = 16
    hidden_channels = 32
    out_channels = 8
    num_layers = 3

    key, kx, kp, kd = jax.random.split(key, 4)
    x = jax.random.normal(kx, (num_nodes, in_channels), jnp.float32)

    # Simple deterministic undirected ring graph (no self loops).
    src = jnp.arange(num_nodes, dtype=jnp.int32)
    dst = (src + 1) % num_nodes
    edge_index = jnp.stack([jnp.concatenate([src, dst]),
                            jnp.concatenate([dst, src])], axis=0)  # [2, 2N]

    params = init_net_params(kp, in_channels, hidden_channels, out_channels,
                             num_layers)

    out = net_forward(x, edge_index, params, kd)
    out = jax.block_until_ready(out)

    assert out.shape == (num_nodes, out_channels)
    assert bool(jnp.all(jnp.isfinite(out)))
    print("KERNEL_OK")
</pallas_src>

<mosaic_0001>
module attributes {stable_mosaic.version = 11 : i64} {
  func.func @_gcn_layer_kernel(%arg0: i32, %arg1: i32, %arg2: memref<256x256xbf16, #tpu.memory_space<vmem>>, %arg3: memref<256x128xbf16, #tpu.memory_space<vmem>>, %arg4: memref<256x128xbf16, #tpu.memory_space<vmem>>, %arg5: memref<256x128xbf16, #tpu.memory_space<vmem>>, %arg6: memref<128x128xbf16, #tpu.memory_space<vmem>>, %arg7: memref<128x128xbf16, #tpu.memory_space<vmem>>, %arg8: memref<256x128xbf16, #tpu.memory_space<vmem>>, %arg9: memref<256x128xf32, #tpu.memory_space<vmem>>) attributes {dimension_semantics = [#tpu.dimension_semantics<parallel>, #tpu.dimension_semantics<arbitrary>], iteration_bounds = array<i64: 1, 1>, scalar_prefetch = 0 : i64, scratch_operands = 1 : i64, tpu.core_type = #tpu.core_type<tc>, window_params = [{transform_indices = @transform_0, window_bounds = array<i64: 256, 256>}, {transform_indices = @transform_1, window_bounds = array<i64: 256, 128>}, {transform_indices = @transform_2, window_bounds = array<i64: 256, 128>}, {transform_indices = @transform_3, window_bounds = array<i64: 256, 128>}, {pipeline_mode = #tpu.pipeline_mode<synchronous>, transform_indices = @transform_4, window_bounds = array<i64: 128, 128>}, {pipeline_mode = #tpu.pipeline_mode<synchronous>, transform_indices = @transform_5, window_bounds = array<i64: 128, 128>}, {transform_indices = @transform_6, window_bounds = array<i64: 256, 128>}]} {
    %c0_i32 = arith.constant 0 : i32
    %0 = arith.cmpi eq, %arg1, %c0_i32 : i32
    %1 = arith.extui %0 : i1 to i32
    %c0_i32_0 = arith.constant 0 : i32
    %2 = arith.cmpi ne, %1, %c0_i32_0 : i32
    scf.if %2 {
      %cst_10 = arith.constant 0.000000e+00 : f32
      %12 = vector.broadcast %cst_10 : f32 to vector<256x128xf32>
      %c0_11 = arith.constant 0 : index
      %c0_12 = arith.constant 0 : index
      %13 = vector.load %arg9[%c0_11, %c0_12] : memref<256x128xf32, #tpu.memory_space<vmem>>, vector<256x128xf32>
      tpu.vector_store %arg9[%c0_11, %c0_12], %12 {strides = array<i32>} : memref<256x128xf32, #tpu.memory_space<vmem>>, vector<256x128xf32>,
    } else {
    }
    %c0 = arith.constant 0 : index
    %c0_1 = arith.constant 0 : index
    %3 = vector.load %arg9[%c0, %c0_1] : memref<256x128xf32, #tpu.memory_space<vmem>>, vector<256x128xf32>
    %c0_2 = arith.constant 0 : index
    %c0_3 = arith.constant 0 : index
    %4 = vector.load %arg2[%c0_2, %c0_3] : memref<256x256xbf16, #tpu.memory_space<vmem>>, vector<256x256xbf16>
    %c0_4 = arith.constant 0 : index
    %c0_5 = arith.constant 0 : index
    %5 = vector.load %arg3[%c0_4, %c0_5] : memref<256x128xbf16, #tpu.memory_space<vmem>>, vector<256x128xbf16>
    %cst = arith.constant dense<0.000000e+00> : vector<256x128xf32>
    %6 = tpu.matmul %4, %5, %cst {dimension_numbers = #tpu.dot_dimension_numbers<[1], [0], [0], [1], [0, 0, 1, 1], [], []>} : vector<256x256xbf16>, vector<256x128xbf16>, vector<256x128xf32> -> vector<256x128xf32>
    %7 = arith.addf %3, %6 : vector<256x128xf32>
    %c0_6 = arith.constant 0 : index
    %c0_7 = arith.constant 0 : index
    %8 = vector.load %arg9[%c0_6, %c0_7] : memref<256x128xf32, #tpu.memory_space<vmem>>, vector<256x128xf32>
    tpu.vector_store %arg9[%c0_6, %c0_7], %7 {strides = array<i32>} : memref<256x128xf32, #tpu.memory_space<vmem>>, vector<256x128xf32>,
    %c0_i32_8 = arith.constant 0 : i32
    %9 = arith.cmpi eq, %arg1, %c0_i32_8 : i32
    %10 = arith.extui %9 : i1 to i32
    %c0_i32_9 = arith.constant 0 : i32
    %11 = arith.cmpi ne, %10, %c0_i32_9 : i32
    scf.if %11 {
      %c0_10 = arith.constant 0 : index
      %c0_11 = arith.constant 0 : index
      %12 = vector.load %arg9[%c0_10, %c0_11] : memref<256x128xf32, #tpu.memory_space<vmem>>, vector<256x128xf32>
      %c0_12 = arith.constant 0 : index
      %c0_13 = arith.constant 0 : index
      %13 = vector.load %arg4[%c0_12, %c0_13] : memref<256x128xbf16, #tpu.memory_space<vmem>>, vector<256x128xbf16>
      %14 = arith.extf %13 : vector<256x128xbf16> to vector<256x128xf32>
      %15 = arith.mulf %12, %14 : vector<256x128xf32>
      %16 = arith.truncf %15 : vector<256x128xf32> to vector<256x128xbf16>
      %c0_14 = arith.constant 0 : index
      %c0_15 = arith.constant 0 : index
      %17 = vector.load %arg6[%c0_14, %c0_15] : memref<128x128xbf16, #tpu.memory_space<vmem>>, vector<128x128xbf16>
      %cst_16 = arith.constant dense<0.000000e+00> : vector<256x128xf32>
      %18 = tpu.matmul %16, %17, %cst_16 {dimension_numbers = #tpu.dot_dimension_numbers<[1], [0], [0], [1], [0, 0, 1, 1], [], []>} : vector<256x128xbf16>, vector<128x128xbf16>, vector<256x128xf32> -> vector<256x128xf32>
      %c0_17 = arith.constant 0 : index
      %c0_18 = arith.constant 0 : index
      %19 = vector.load %arg5[%c0_17, %c0_18] : memref<256x128xbf16, #tpu.memory_space<vmem>>, vector<256x128xbf16>
      %c0_19 = arith.constant 0 : index
      %c0_20 = arith.constant 0 : index
      %20 = vector.load %arg7[%c0_19, %c0_20] : memref<128x128xbf16, #tpu.memory_space<vmem>>, vector<128x128xbf16>
      %cst_21 = arith.constant dense<0.000000e+00> : vector<256x128xf32>
      %21 = tpu.matmul %19, %20, %cst_21 {dimension_numbers = #tpu.dot_dimension_numbers<[1], [0], [0], [1], [0, 0, 1, 1], [], []>} : vector<256x128xbf16>, vector<128x128xbf16>, vector<256x128xf32> -> vector<256x128xf32>
      %22 = arith.addf %18, %21 : vector<256x128xf32>
      %cst_22 = arith.constant dense<0.000000e+00> : vector<256xf32>
      %23 = vector.multi_reduction <add>, %22, %cst_22 [1] : vector<256x128xf32> to vector<256xf32>
      %24 = vector.shape_cast %23 : vector<256xf32> to vector<256x1xf32>
      %cst_23 = arith.constant 3.125000e-02 : f32
      %25 = vector.broadcast %cst_23 : f32 to vector<256x1xf32>
      %26 = arith.mulf %24, %25 : vector<256x1xf32>
      %27 = tpu.iota {dimensions = array<i32: 1>} : vector<256x128xi32>
      %c32_i32 = arith.constant 32 : i32
      %28 = vector.broadcast %c32_i32 : i32 to vector<256x128xi32>
      %29 = arith.cmpi slt, %27, %28 : vector<256x128xi32>
      %30 = vector.broadcast %26 : vector<256x1xf32> to vector<256x128xf32>
      %31 = arith.subf %22, %30 : vector<256x128xf32>
      %cst_24 = arith.constant 0.000000e+00 : f32
      %32 = vector.broadcast %cst_24 : f32 to vector<256x128xf32>
      %33 = arith.select %29, %31, %32 : vector<256x128xi1>, vector<256x128xf32>
      %34 = arith.mulf %33, %33 : vector<256x128xf32>
      %cst_25 = arith.constant dense<0.000000e+00> : vector<256xf32>
      %35 = vector.multi_reduction <add>, %34, %cst_25 [1] : vector<256x128xf32> to vector<256xf32>
      %36 = vector.shape_cast %35 : vector<256xf32> to vector<256x1xf32>
      %cst_26 = arith.constant 3.125000e-02 : f32
      %37 = vector.broadcast %cst_26 : f32 to vector<256x1xf32>
      %38 = arith.mulf %36, %37 : vector<256x1xf32>
      %cst_27 = arith.constant 9.99999974E-6 : f32
      %39 = vector.broadcast %cst_27 : f32 to vector<256x1xf32>
      %40 = arith.addf %38, %39 : vector<256x1xf32>
      %41 = math.rsqrt %40 : vector<256x1xf32>
      %42 = vector.broadcast %41 : vector<256x1xf32> to vector<256x128xf32>
      %43 = arith.mulf %33, %42 : vector<256x128xf32>
      %cst_28 = arith.constant 0.000000e+00 : f32
      %44 = vector.broadcast %cst_28 : f32 to vector<256x128xf32>
      %45 = arith.maximumf %43, %44 : vector<256x128xf32>
      %46 = arith.truncf %45 : vector<256x128xf32> to vector<256x128xbf16>
      %c0_29 = arith.constant 0 : index
      %c0_30 = arith.constant 0 : index
      %47 = vector.load %arg8[%c0_29, %c0_30] : memref<256x128xbf16, #tpu.memory_space<vmem>>, vector<256x128xbf16>
      tpu.vector_store %arg8[%c0_29, %c0_30], %46 {strides = array<i32>} : memref<256x128xbf16, #tpu.memory_space<vmem>>, vector<256x128xbf16>,
    } else {
    }
    return
  }
  func.func @transform_0(%arg0: i32, %arg1: i32) -> (i32, i32) {
    %c0_i32 = arith.constant 0 : i32
    return %arg0, %arg1 : i32, i32
  }
  func.func @transform_1(%arg0: i32, %arg1: i32) -> (i32, i32) {
    %c0_i32 = arith.constant 0 : i32
    %c0_i32_0 = arith.constant 0 : i32
    return %arg1, %c0_i32 : i32, i32
  }
  func.func @transform_2(%arg0: i32, %arg1: i32) -> (i32, i32) {
    %c0_i32 = arith.constant 0 : i32
    %c0_i32_0 = arith.constant 0 : i32
    return %arg0, %c0_i32 : i32, i32
  }
  func.func @transform_3(%arg0: i32, %arg1: i32) -> (i32, i32) {
    %c0_i32 = arith.constant 0 : i32
    %c0_i32_0 = arith.constant 0 : i32
    return %arg0, %c0_i32 : i32, i32
  }
  func.func @transform_4(%arg0: i32, %arg1: i32) -> (i32, i32) {
    %c0_i32 = arith.constant 0 : i32
    %c0_i32_0 = arith.constant 0 : i32
    %c0_i32_1 = arith.constant 0 : i32
    return %c0_i32, %c0_i32_0 : i32, i32
  }
  func.func @transform_5(%arg0: i32, %arg1: i32) -> (i32, i32) {
    %c0_i32 = arith.constant 0 : i32
    %c0_i32_0 = arith.constant 0 : i32
    %c0_i32_1 = arith.constant 0 : i32
    return %c0_i32, %c0_i32_0 : i32, i32
  }
  func.func @transform_6(%arg0: i32, %arg1: i32) -> (i32, i32) {
    %c0_i32 = arith.constant 0 : i32
    %c0_i32_0 = arith.constant 0 : i32
    return %arg0, %c0_i32 : i32, i32
  }
}

</mosaic_0001>

<bundles_post_ra>
// kernel: tpu_custom_call.1
= control target key start
LH: loop header
LB: loop body
LE: loop exit
PB: predicated region body
PF: predicated region fallthrough
CT: control target
= control target key end

     0   :  { %11 = vsyncpa [#allocation4], 0  ;;  %s3389_s0 = inlined_call_operand.hbm [shape: bf16[256,256], index: 0, kind: input, shape index: {}]   ;;  %s3390_s1 = inlined_call_operand.hbm [shape: bf16[256,128], index: 1, kind: input, shape index: {}]   ;;  %s3391_s2 = inlined_call_operand.hbm [shape: bf16[256,128], index: 2, kind: input, shape index: {}]   ;;  %s3392_s3 = inlined_call_operand.hbm [shape: bf16[256,128], index: 3, kind: input, shape index: {}]   ;;  %s3393_s4 = inlined_call_operand.hbm [shape: bf16[128,128], index: 4, kind: input, shape index: {}]   ;;  %s3394_s5 = inlined_call_operand.hbm [shape: bf16[128,128], index: 5, kind: input, shape index: {}]   ;;  %s3395_s6 = inlined_call_operand.hbm [shape: bf16[256,128], index: 6, kind: output, shape index: {}]  }
   0x1   :  { %12 = vsyncpa [#allocation7], 0 }
   0x2   :  { %13 = vsyncpa [#allocation10], 0 }
   0x3   :  { %14 = vsyncpa [#allocation13], 0  ;;  %s33_s23 = sshll.u32 %s3390_s1, 4  ;;  %s34_s23 = int_to_ptr.hbm [resolvable:$true] %s33_s23 }
   0x4   :  { %15 = vsyncpa [#allocation5], 0  ;;  %s2949_s24 = smov [#allocation6]   ;;  %s59_s28 = sshll.u32 %s3392_s3, 4  ;;  %s60_s28 = int_to_ptr.hbm [resolvable:$true] %s59_s28 }
   0x5   :  { %s35_s25 = sshll.u32 %s2949_s24, 4  ;;  %s2950_s29 = smov 64   ;;  %s36_s25 = int_to_ptr.vmem [resolvable:$true] %s35_s25 }
   0x6   :  { %s2951_s30 = smov 4   ;;  %s2952_s7 = smov [#allocation9]  }
   0x7   :  { %41 = dma.hbm_to_vmem [thread:$0]  %s34_s23, 2048, %s36_s25, [#allocation7], %s2950_s29, %s2950_s29, %s2951_s30  }
   0x8   :  { %s61_s8 = sshll.u32 %s2952_s7, 4  ;;  %s20_s10 = sshll.u32 %s3389_s0, 4  ;;  %s62_s8 = int_to_ptr.vmem [resolvable:$true] %s61_s8  ;;  %s21_s10 = int_to_ptr.hbm [resolvable:$true] %s20_s10 }
   0x9   :  { %67 = dma.hbm_to_vmem [thread:$0]  %s60_s28, 2048, %s62_s8, [#allocation10], %s2950_s29, %s2950_s29, %s2951_s30  }
   0xa   :  { %s2953_s3 = smov [#allocation3]   ;;  %s46_s14 = sshll.u32 %s3391_s2, 4  ;;  %s47_s14 = int_to_ptr.hbm [resolvable:$true] %s46_s14 }
   0xb   :  { %s22_s11 = sshll.u32 %s2953_s3, 4  ;;  %s2954_s15 = smov 128   ;;  %s23_s11 = int_to_ptr.vmem [resolvable:$true] %s22_s11 }
   0xc   :  { %s2955_s16 = smov 8   ;;  %s2956_s17 = smov [#allocation8]  }
   0xd   :  { %28 = dma.hbm_to_vmem [thread:$0]  %s21_s10, 4096, %s23_s11, [#allocation4], %s2954_s15, %s2954_s15, %s2955_s16  }
   0xe   :  { %s48_s18 = sshll.u32 %s2956_s17, 4  ;;  %s72_s20 = sshll.u32 %s3393_s4, 4  ;;  %s49_s18 = int_to_ptr.vmem [resolvable:$true] %s48_s18  ;;  %s73_s20 = int_to_ptr.hbm [resolvable:$true] %s72_s20 }
   0xf   :  { %54 = dma.hbm_to_vmem [thread:$0]  %s47_s14, 2048, %s49_s18, [#allocation7], %s2950_s29, %s2950_s29, %s2951_s30  }
  0x10   :  { %s85_s2 = sshll.u32 %s3394_s5, 4  ;;  %s2957_s23 = smov [#allocation11]   ;;  %s86_s2 = int_to_ptr.hbm [resolvable:$true] %s85_s2 }
  0x11   :  { %s74_s24 = sshll.u32 %s2957_s23, 4  ;;  %s2958_s25 = smov [#allocation12]   ;;  %s75_s24 = int_to_ptr.vmem [resolvable:$true] %s74_s24 }
  0x12   :  { %80 = dma.hbm_to_vmem [thread:$0]  %s73_s20, 1024, %s75_s24, [#allocation10], %s2950_s29, %s2950_s29, %s2951_s30  }
  0x13   :  { %s87_s4 = sshll.u32 %s2958_s25, 4  ;;  %s88_s4 = int_to_ptr.vmem [resolvable:$true] %s87_s4 }
  0x14   :  { %93 = dma.hbm_to_vmem [thread:$0]  %s86_s2, 1024, %s88_s4, [#allocation13], %s2950_s29, %s2950_s29, %s2951_s30  }
  0x15   :  { %2939 = dma.done.wait [#allocation4], 4096  }
  0x16   :  { %2940 = vsyncadd [#allocation4], 4294963200 }
  0x17   :  { %2941 = dma.done.wait [#allocation7], 4096  }
  0x18   :  { %2942 = vsyncadd [#allocation7], 4294963200 }
  0x19   :  { %2943 = dma.done.wait [#allocation10], 3072  }
  0x1a   :  { %2944 = vsyncadd [#allocation10], 4294964224 }
  0x1b   :  { %2945 = dma.done.wait [#allocation13], 1024  }
  0x1c   :  { %2946 = vsyncadd [#allocation13], 4294966272  ;;  %v2481_v0 = vld [vmem:[#allocation6 + $0x38] sm:$0xff]  ;;  %v2480_v2 = vld [vmem:[#allocation6 + $0x30] sm:$0xff]  ;;  %s2959_s5 = smov [#allocation14]   ;;  %s2106_s7 = sshll.u32 %s3395_s6, 4  ;;  %s2107_s7 = int_to_ptr.hbm [resolvable:$true] %s2106_s7 }
  0x1d   :  { %v2489_v1 = vld [vmem:[#allocation6 + $0x78] sm:$0xff]  ;;  %506 = vmatpush.bf16.msra.mxu0 %v2481_v0  ;;  %v2488_v3 = vld [vmem:[#allocation6 + $0x70] sm:$0xff]  ;;  %v2479_v4 = vld [vmem:[#allocation6 + $0x28] sm:$0xff]  ;;  %s2104_s26 = sshll.u32 %s2959_s5, 4  ;;  %s2105_s26 = int_to_ptr.vmem [resolvable:$true] %s2104_s26 }
  0x1e   :  { %595 = vmatpush.bf16.msra.mxu1 %v2489_v1  ;;  %v2487_v5 = vld [vmem:[#allocation6 + $0x68] sm:$0xff]  ;;  %v2478_v6 = vld [vmem:[#allocation6 + $0x20] sm:$0xff]  ;;  %v2477_v8 = vld [vmem:[#allocation6 + $0x18] sm:$0xff] }
  0x1f   :  { %v2486_v7 = vld [vmem:[#allocation6 + $0x60] sm:$0xff]  ;;  %v2485_v9 = vld [vmem:[#allocation6 + $0x58] sm:$0xff]  ;;  %v2476_v10 = vld [vmem:[#allocation6 + $0x10] sm:$0xff] }
  0x20   :  { %v2484_v11 = vld [vmem:[#allocation6 + $0x50] sm:$0xff]  ;;  %v2475_v12 = vld [vmem:[#allocation6 + $0x8] sm:$0xff]  ;;  %v2474_v14 = vld [vmem:[#allocation6] sm:$0xff] }
  0x21   :  { %507 = vmatpush.bf16.msra.mxu0 %v2480_v2  ;;  %v2483_v13 = vld [vmem:[#allocation6 + $0x48] sm:$0xff]  ;;  %v2482_v15 = vld [vmem:[#allocation6 + $0x40] sm:$0xff]  ;;  %v2132_v22 = vld [vmem:[#allocation3 + $0x10] sm:$0xf] }
  0x22   :  { %596 = vmatpush.bf16.msra.mxu1 %v2488_v3  ;;  %v2124_v16 = vld [vmem:[#allocation3] sm:$0xf]  ;;  %v2443_v17 = vld [vmem:[#allocation3 + $0x4] sm:$0xf0]  ;;  %v2442_v18 = vld [vmem:[#allocation3 + $0x4] sm:$0xf] }
  0x23   :  { %v2126_v19 = vld [vmem:[#allocation3 + $0x8] sm:$0xf0]  ;;  %v2125_v20 = vor.u32 %v2443_v17, %v2124_v16  ;;  %v2445_v23 = vld [vmem:[#allocation3 + $0x14] sm:$0xf0]  ;;  %v2444_v24 = vld [vmem:[#allocation3 + $0x14] sm:$0xf] }
  0x24   :  { %v2129_v21 = vor.u32 %v2442_v18, %v2126_v19  ;;  %v2134_v25 = vld [vmem:[#allocation3 + $0x18] sm:$0xf0]  ;;  %v2133_v26 = vor.u32 %v2445_v23, %v2132_v22  ;;  %v2140_v28 = vld [vmem:[#allocation3 + $0x20] sm:$0xf]  ;;  %v2447_v29 = vld [vmem:[#allocation3 + $0x24] sm:$0xf0] }
  0x25   :  { %508 = vmatpush.bf16.msra.mxu0 %v2479_v4  ;;  %v2137_v27 = vor.u32 %v2444_v24, %v2134_v25  ;;  %v2446_v30 = vld [vmem:[#allocation3 + $0x24] sm:$0xf]  ;;  %v2142_v31 = vld [vmem:[#allocation3 + $0x28] sm:$0xf0]  ;;  %v2141_v32 = vor.u32 %v2447_v29, %v2140_v28  ;;  %v2148_v34 = vld [vmem:[#allocation3 + $0x30] sm:$0xf] }
  0x26   :  { %597 = vmatpush.bf16.msra.mxu1 %v2487_v5  ;;  %v2145_v33 = vor.u32 %v2446_v30, %v2142_v31  ;;  %v2449_v35 = vld [vmem:[#allocation3 + $0x34] sm:$0xf0]  ;;  %v2448_v36 = vld [vmem:[#allocation3 + $0x34] sm:$0xf]  ;;  %v2150_v37 = vld [vmem:[#allocation3 + $0x38] sm:$0xf0] }
  0x27   :  { %v2149_v38 = vor.u32 %v2449_v35, %v2148_v34  ;;  %v2153_v39 = vor.u32 %v2448_v36, %v2150_v37  ;;  %v2156_v40 = vld [vmem:[#allocation3 + $0x40] sm:$0xf]  ;;  %v2451_v41 = vld [vmem:[#allocation3 + $0x44] sm:$0xf0]  ;;  %v2450_v42 = vld [vmem:[#allocation3 + $0x44] sm:$0xf] }
  0x28   :  { %v2158_v43 = vld [vmem:[#allocation3 + $0x48] sm:$0xf0]  ;;  %v2157_v44 = vor.u32 %v2451_v41, %v2156_v40  ;;  %v2521_v46 = vld [vmem:[#allocation12 + $0x38] sm:$0xff]  ;;  %v2520_v48 = vld [vmem:[#allocation12 + $0x30] sm:$0xff] }
  0x29   :  { %509 = vmatpush.bf16.msra.mxu0 %v2478_v6  ;;  %v2161_v45 = vor.u32 %v2450_v42, %v2158_v43  ;;  %v2497_v47 = vld [vmem:[#allocation11 + $0x38] sm:$0xff]  ;;  %1103 = vmatpush.bf16.msra.mxu2 %v2521_v46  ;;  %v2519_v49 = vld [vmem:[#allocation12 + $0x28] sm:$0xff]  ;;  %v2164_v50 = vld [vmem:[#allocation3 + $0x50] sm:$0xf] }
  0x2a   :  { %598 = vmatpush.bf16.msra.mxu1 %v2486_v7  ;;  %1240 = vmatpush.bf16.msra.mxu3 %v2497_v47  ;;  %v2453_v51 = vld [vmem:[#allocation3 + $0x54] sm:$0xf0]  ;;  %v2452_v52 = vld [vmem:[#allocation3 + $0x54] sm:$0xf]  ;;  %v2166_v53 = vld [vmem:[#allocation3 + $0x58] sm:$0xf0] }
  0x2b   :  { %v2165_v54 = vor.u32 %v2453_v51, %v2164_v50  ;;  %v2169_v55 = vor.u32 %v2452_v52, %v2166_v53  ;;  %v2518_v56 = vld [vmem:[#allocation12 + $0x20] sm:$0xff]  ;;  %v2496_v57 = vld [vmem:[#allocation11 + $0x30] sm:$0xff]  ;;  %v2517_v58 = vld [vmem:[#allocation12 + $0x18] sm:$0xff] }
  0x2c   :  { %v2495_v59 = vld [vmem:[#allocation11 + $0x28] sm:$0xff]  ;;  %v2516_v60 = vld [vmem:[#allocation12 + $0x10] sm:$0xff]  ;;  %v2494_v61 = vld [vmem:[#allocation11 + $0x20] sm:$0xff] }
  0x2d   :  { %510 = vmatpush.bf16.msra.mxu0 %v2477_v8  ;;  %1104 = vmatpush.bf16.msra.mxu2 %v2520_v48  ;;  %v2172_v62 = vld [vmem:[#allocation3 + $0x60] sm:$0xf]  ;;  %v2455_v63 = vld [vmem:[#allocation3 + $0x64] sm:$0xf0]  ;;  %v2454_v0 = vld [vmem:[#allocation3 + $0x64] sm:$0xf] }
  0x2e   :  { %599 = vmatpush.bf16.msra.mxu1 %v2485_v9  ;;  %1241 = vmatpush.bf16.msra.mxu3 %v2496_v57  ;;  %v2174_v1 = vld [vmem:[#allocation3 + $0x68] sm:$0xf0]  ;;  %v2493_v3 = vld [vmem:[#allocation11 + $0x18] sm:$0xff]  ;;  %v2173_v4 = vor.u32 %v2455_v63, %v2172_v62  ;;  %v2514_v6 = vld [vmem:[#allocation12] sm:$0xff] }
  0x2f   :  { %v2515_v2 = vld [vmem:[#allocation12 + $0x8] sm:$0xff]  ;;  %v2177_v5 = vor.u32 %v2454_v0, %v2174_v1  ;;  %v2492_v7 = vld [vmem:[#allocation11 + $0x10] sm:$0xff]  ;;  %v2498_v8 = vld [vmem:[#allocation9] sm:$0xff] }
  0x30   :  { %v2491_v9 = vld [vmem:[#allocation11 + $0x8] sm:$0xff]  ;;  %v2188_v18 = vld [vmem:[#allocation3 + $0x80] sm:$0xf]  ;;  %v2196_v36 = vld [vmem:[#allocation3 + $0x90] sm:$0xf] }
  0x31   :  { %511 = vmatpush.bf16.msra.mxu0 %v2476_v10  ;;  %1105 = vmatpush.bf16.msra.mxu2 %v2519_v49  ;;  %v2490_v10 = vld [vmem:[#allocation11] sm:$0xff]  ;;  %v2499_v17 = vld [vmem:[#allocation9 + $0x8] sm:$0xff]  ;;  %v2461_v37 = vld [vmem:[#allocation3 + $0x94] sm:$0xf0] }
  0x32   :  { %600 = vmatpush.bf16.msra.mxu1 %v2484_v11  ;;  %1242 = vmatpush.bf16.msra.mxu3 %v2495_v59  ;;  %v2180_v11 = vld [vmem:[#allocation3 + $0x70] sm:$0xf]  ;;  %v2459_v19 = vld [vmem:[#allocation3 + $0x84] sm:$0xf0]  ;;  %v2197_v41 = vor.u32 %v2461_v37, %v2196_v36  ;;  %v2462_v57 = vld [vmem:[#allocation3 + $0xa4] sm:$0xf] }
  0x33   :  { %v2189_v22 = vor.u32 %v2459_v19, %v2188_v18  ;;  %v2666_v46 = vld [vmem:[#allocation8 + $0x8] sm:$0xff]   ;;  %v2502_v0 = vld [vmem:[#allocation9 + $0x20] sm:$0xff]  ;;  %v2667_v1 = vld [vmem:[#allocation8 + $0x10] sm:$0xff]  }
  0x34   :  { %v2528_v48 = vunpack.c.l.bf16 %v2666_v46  ;;  %v2529_v49 = vunpack.c.h.bf16 %v2666_v46  ;;  %v2503_v19 = vld [vmem:[#allocation9 + $0x28] sm:$0xff] }
  0x35   :  { %512 = vmatpush.bf16.msra.mxu0 %v2475_v12  ;;  %1106 = vmatpush.bf16.msra.mxu2 %v2518_v56  ;;  %v2457_v12 = vld [vmem:[#allocation3 + $0x74] sm:$0xf0]  ;;  %v2463_v56 = vld [vmem:[#allocation3 + $0xa4] sm:$0xf0] }
  0x36   :  { %601 = vmatpush.bf16.msra.mxu1 %v2483_v13  ;;  %1243 = vmatpush.bf16.msra.mxu3 %v2494_v61  ;;  %v2456_v13 = vld [vmem:[#allocation3 + $0x74] sm:$0xf] }
  0x39   :  { %513 = vmatpush.bf16.msra.mxu0 %v2474_v14  ;;  %1107 = vmatpush.bf16.msra.mxu2 %v2517_v58  ;;  %v2182_v14 = vld [vmem:[#allocation3 + $0x78] sm:$0xf0]  ;;  %v2206_v58 = vld [vmem:[#allocation3 + $0xa8] sm:$0xf0] }
  0x3a   :  { %602 = vmatpush.bf16.msra.mxu1 %v2482_v15  ;;  %1244 = vmatpush.bf16.msra.mxu3 %v2493_v3  ;;  %v2181_v15 = vor.u32 %v2457_v12, %v2180_v11  ;;  %v2185_v16 = vor.u32 %v2456_v13, %v2182_v14  ;;  %v2209_v61 = vor.u32 %v2462_v57, %v2206_v58  ;;  %v2532_v3 = vunpack.c.l.bf16 %v2667_v1  ;;  %v2465_v11 = vld [vmem:[#allocation3 + $0xb4] sm:$0xf0]  ;;  %v2464_v12 = vld [vmem:[#allocation3 + $0xb4] sm:$0xf]  ;;  %v2214_v13 = vld [vmem:[#allocation3 + $0xb8] sm:$0xf0] }
  0x3b   :  { %v2505_v57 = vld [vmem:[#allocation9 + $0x38] sm:$0xff]  ;;  %v2670_v58 = vld [vmem:[#allocation8 + $0x28] sm:$0xff]  }
  0x3c   :  { %514 = vmatmul.bf16.vlgmr.msra.gmra.mxu0 %v2125_v20  ;;  %v2458_v20 = vld [vmem:[#allocation3 + $0x84] sm:$0xf] }
  0x3d   :  { %603 = vmatmul.bf16.vlgmr.msra.gmra.mxu1 %v2129_v21  ;;  %1108 = vmatpush.bf16.msra.mxu2 %v2516_v60  ;;  %v2190_v21 = vld [vmem:[#allocation3 + $0x88] sm:$0xf0] }
  0x3e   :  { %1245 = vmatpush.bf16.msra.mxu3 %v2492_v7  ;;  %v2193_v23 = vor.u32 %v2458_v20, %v2190_v21  ;;  %v2668_v20 = vld [vmem:[#allocation8 + $0x18] sm:$0xff]  }
  0x41   :  { %1109 = vmatpush.bf16.msra.mxu2 %v2515_v2 }
  0x42   :  { %1246 = vmatpush.bf16.msra.mxu3 %v2491_v9 }
  0x45   :  { %1110 = vmatpush.bf16.msra.mxu2 %v2514_v6 }
  0x46   :  { %1247 = vmatpush.bf16.msra.mxu3 %v2490_v10  ;;  %v2212_v10 = vld [vmem:[#allocation3 + $0xb0] sm:$0xf] }
  0x48   :  { %1111 = vmatmul.bf16.vlgmr.msra.gmra.mxu2 %v2498_v8 }
  0x4c   :  { %519 = vmatmul.bf16.gmra.mxu0 %v2133_v26  ;;  %v2500_v26 = vld [vmem:[#allocation9 + $0x10] sm:$0xff] }
  0x4d   :  { %608 = vmatmul.bf16.gmra.mxu1 %v2137_v27  ;;  %v2523_v27 = vld [vmem:[#allocation8] sm:$0xff]  }
  0x4e   :  { %v2524_v29 = vunpack.c.l.bf16 %v2523_v27  ;;  %v2525_v30 = vunpack.c.h.bf16 %v2523_v27 }
  0x58   :  { %1116 = vmatmul.bf16.gmra.mxu2 %v2499_v17 }
  0x5c   :  { %524 = vmatmul.bf16.gmra.mxu0 %v2141_v32 }
  0x5d   :  { %613 = vmatmul.bf16.gmra.mxu1 %v2145_v33 }
  0x68   :  { %1121 = vmatmul.bf16.gmra.mxu2 %v2500_v26 }
  0x6c   :  { %529 = vmatmul.bf16.gmra.mxu0 %v2149_v38  ;;  %v2460_v38 = vld [vmem:[#allocation3 + $0x94] sm:$0xf] }
  0x6d   :  { %618 = vmatmul.bf16.gmra.mxu1 %v2153_v39  ;;  %v2198_v39 = vld [vmem:[#allocation3 + $0x98] sm:$0xf0] }
  0x6e   :  { %v2201_v42 = vor.u32 %v2460_v38, %v2198_v39  ;;  %v2504_v38 = vld [vmem:[#allocation9 + $0x30] sm:$0xff]  ;;  %v2669_v39 = vld [vmem:[#allocation8 + $0x20] sm:$0xff]  }
  0x7c   :  { %534 = vmatmul.bf16.gmra.mxu0 %v2157_v44 }
  0x7d   :  { %623 = vmatmul.bf16.gmra.mxu1 %v2161_v45  ;;  %v2501_v45 = vld [vmem:[#allocation9 + $0x18] sm:$0xff] }
  0x7e   :  { %1126 = vmatmul.bf16.gmra.mxu2 %v2501_v45 }
  0x8c   :  { %539 = vmatmul.bf16.gmra.mxu0 %v2165_v54 }
  0x8d   :  { %628 = vmatmul.bf16.gmra.mxu1 %v2169_v55  ;;  %v2204_v55 = vld [vmem:[#allocation3 + $0xa0] sm:$0xf] }
  0x8e   :  { %v2205_v60 = vor.u32 %v2463_v56, %v2204_v55  ;;  %1131 = vmatmul.bf16.gmra.mxu2 %v2502_v0 }
  0x9c   :  { %544 = vmatmul.bf16.gmra.mxu0 %v2173_v4  ;;  %v2533_v4 = vunpack.c.h.bf16 %v2667_v1 }
  0x9d   :  { %633 = vmatmul.bf16.gmra.mxu1 %v2177_v5 }
  0x9e   :  { %1136 = vmatmul.bf16.gmra.mxu2 %v2503_v19 }
  0xac   :  { %549 = vmatmul.bf16.gmra.mxu0 %v2181_v15  ;;  %v2213_v15 = vor.u32 %v2465_v11, %v2212_v10 }
  0xad   :  { %638 = vmatmul.bf16.gmra.mxu1 %v2185_v16  ;;  %v2217_v16 = vor.u32 %v2464_v12, %v2214_v13  ;;  %v2506_v12 = vld [vmem:[#allocation9 + $0x40] sm:$0xff]  ;;  %v2671_v13 = vld [vmem:[#allocation8 + $0x30] sm:$0xff]  }
  0xae   :  { %1141 = vmatmul.bf16.gmra.mxu2 %v2504_v38 }
  0xb9   :  { %v515_v24 = vpop.f32.mrf.mxu0 }
  0xba   :  { %v604_v25 = vpop.f32.mrf.mxu1 }
  0xbb   :  { %v605_v28 = vadd.f32 %v604_v25, %v515_v24 }
  0xbc   :  { %554 = vmatmul.bf16.gmra.mxu0 %v2189_v22  ;;  %v2536_v22 = vunpack.c.l.bf16 %v2668_v20 }
  0xbd   :  { %643 = vmatmul.bf16.gmra.mxu1 %v2193_v23  ;;  %v847_v34 = vmul.f32 %v2524_v29, %v605_v28  ;;  %v2537_v23 = vunpack.c.h.bf16 %v2668_v20  ;;  %v2220_v29 = vld [vmem:[#allocation3 + $0xc0] sm:$0xf] }
  0xbe   :  { %1146 = vmatmul.bf16.gmra.mxu2 %v2505_v57 }
  0xc1   :  { %v517_v31 = vpop.f32.mrf.mxu0 }
  0xc2   :  { %v606_v32 = vpop.f32.mrf.mxu1 }
  0xc3   :  { %v607_v33 = vadd.f32 %v606_v32, %v517_v31  ;;  %v2466_v31 = vld [vmem:[#allocation3 + $0xc4] sm:$0xf]  ;;  %v2222_v32 = vld [vmem:[#allocation3 + $0xc8] sm:$0xf0] }
  0xc5   :  { %v848_v35 = vmul.f32 %v2525_v30, %v607_v33  ;;  %v2467_v30 = vld [vmem:[#allocation3 + $0xc4] sm:$0xf0] }
  0xc7   :  { %v879_v40 = vpack.c.bf16 %v848_v35, %v847_v34  ;;  %v2221_v34 = vor.u32 %v2467_v30, %v2220_v29  ;;  %v2225_v35 = vor.u32 %v2466_v31, %v2222_v32 }
  0xc9   :  { %1248 = vmatmul.bf16.vlgmr.msra.gmra.mxu3 %v879_v40  ;;  %v520_v43 = vpop.f32.mrf.mxu0 }
  0xca   :  { %v609_v44 = vpop.f32.mrf.mxu1 }
  0xcb   :  { %v610_v47 = vadd.f32 %v609_v44, %v520_v43  ;;  %v1112_v20 = vpop.f32.mrf.mxu2 }
  0xcc   :  { %559 = vmatmul.bf16.gmra.mxu0 %v2197_v41  ;;  %v2540_v41 = vunpack.c.l.bf16 %v2669_v39 }
  0xcd   :  { %648 = vmatmul.bf16.gmra.mxu1 %v2201_v42  ;;  %v849_v53 = vmul.f32 %v2528_v48, %v610_v47  ;;  %v2541_v42 = vunpack.c.h.bf16 %v2669_v39  ;;  %v2228_v48 = vld [vmem:[#allocation3 + $0xd0] sm:$0xf] }
  0xce   :  { %1151 = vmatmul.bf16.gmra.mxu2 %v2506_v12 }
  0xd1   :  { %v522_v50 = vpop.f32.mrf.mxu0 }
  0xd2   :  { %v611_v51 = vpop.f32.mrf.mxu1 }
  0xd3   :  { %v612_v52 = vadd.f32 %v611_v51, %v522_v50  ;;  %v2468_v50 = vld [vmem:[#allocation3 + $0xd4] sm:$0xf]  ;;  %v2230_v51 = vld [vmem:[#allocation3 + $0xd8] sm:$0xf0]  ;;  %v1114_v32 = vpop.f32.mrf.mxu2 }
  0xd5   :  { %v850_v54 = vmul.f32 %v2529_v49, %v612_v52  ;;  %v2469_v49 = vld [vmem:[#allocation3 + $0xd4] sm:$0xf0] }
  0xd7   :  { %v880_v59 = vpack.c.bf16 %v850_v54, %v849_v53  ;;  %v2229_v53 = vor.u32 %v2469_v49, %v2228_v48  ;;  %v2233_v54 = vor.u32 %v2468_v50, %v2230_v51  ;;  %v2673_v48 = vld [vmem:[#allocation8 + $0x40] sm:$0xff]   ;;  %v2508_v49 = vld [vmem:[#allocation9 + $0x50] sm:$0xff] }
  0xd8   :  { %v2556_v51 = vunpack.c.l.bf16 %v2673_v48 }
  0xd9   :  { %1253 = vmatmul.bf16.gmra.mxu3 %v880_v59  ;;  %v525_v62 = vpop.f32.mrf.mxu0 }
  0xda   :  { %v614_v63 = vpop.f32.mrf.mxu1 }
  0xdb   :  { %v615_v2 = vadd.f32 %v614_v63, %v525_v62 }
  0xdc   :  { %564 = vmatmul.bf16.gmra.mxu0 %v2205_v60  ;;  %v2544_v60 = vunpack.c.l.bf16 %v2670_v58 }
  0xdd   :  { %653 = vmatmul.bf16.gmra.mxu1 %v2209_v61  ;;  %v851_v8 = vmul.f32 %v2532_v3, %v615_v2  ;;  %v2545_v61 = vunpack.c.h.bf16 %v2670_v58  ;;  %v2236_v3 = vld [vmem:[#allocation3 + $0xe0] sm:$0xf] }
  0xe1   :  { %v527_v5 = vpop.f32.mrf.mxu0 }
  0xe2   :  { %v616_v6 = vpop.f32.mrf.mxu1 }
  0xe3   :  { %v617_v7 = vadd.f32 %v616_v6, %v527_v5  ;;  %v2470_v5 = vld [vmem:[#allocation3 + $0xe4] sm:$0xf]  ;;  %v2238_v6 = vld [vmem:[#allocation3 + $0xe8] sm:$0xf0] }
  0xe5   :  { %v852_v9 = vmul.f32 %v2533_v4, %v617_v7  ;;  %v2471_v4 = vld [vmem:[#allocation3 + $0xe4] sm:$0xf0] }
  0xe7   :  { %v881_v14 = vpack.c.bf16 %v852_v9, %v851_v8  ;;  %v2237_v8 = vor.u32 %v2471_v4, %v2236_v3  ;;  %v2241_v9 = vor.u32 %v2470_v5, %v2238_v6 }
  0xe9   :  { %1258 = vmatmul.bf16.gmra.mxu3 %v881_v14  ;;  %v530_v17 = vpop.f32.mrf.mxu0 }
  0xea   :  { %v619_v18 = vpop.f32.mrf.mxu1 }
  0xeb   :  { %v620_v21 = vadd.f32 %v619_v18, %v530_v17 }
  0xec   :  { %569 = vmatmul.bf16.gmra.mxu0 %v2213_v15  ;;  %v2548_v15 = vunpack.c.l.bf16 %v2671_v13 }
  0xed   :  { %658 = vmatmul.bf16.gmra.mxu1 %v2217_v16  ;;  %v853_v27 = vmul.f32 %v2536_v22, %v620_v21  ;;  %v2549_v16 = vunpack.c.h.bf16 %v2671_v13 }
  0xf1   :  { %v532_v24 = vpop.f32.mrf.mxu0 }
  0xf2   :  { %v621_v25 = vpop.f32.mrf.mxu1 }
  0xf3   :  { %v622_v26 = vadd.f32 %v621_v25, %v532_v24  ;;  %v2473_v24 = vld [vmem:[#allocation3 + $0xf4] sm:$0xf0]  ;;  %v2472_v25 = vld [vmem:[#allocation3 + $0xf4] sm:$0xf] }
  0xf5   :  { %v854_v28 = vmul.f32 %v2537_v23, %v622_v26  ;;  %v2244_v23 = vld [vmem:[#allocation3 + $0xf0] sm:$0xf]  ;;  %v2246_v26 = vld [vmem:[#allocation3 + $0xf8] sm:$0xf0] }
  0xf6   :  { %v2249_v29 = vor.u32 %v2472_v25, %v2246_v26 }
  0xf7   :  { %v882_v33 = vpack.c.bf16 %v854_v28, %v853_v27  ;;  %v2245_v28 = vor.u32 %v2473_v24, %v2244_v23 }
  0xf9   :  { %1263 = vmatmul.bf16.gmra.mxu3 %v882_v33  ;;  %v535_v36 = vpop.f32.mrf.mxu0  ;;  %v2672_v33 = vld [vmem:[#allocation8 + $0x38] sm:$0xff]  }
  0xfa   :  { %v624_v37 = vpop.f32.mrf.mxu1 }
  0xfb   :  { %v625_v40 = vadd.f32 %v624_v37, %v535_v36  ;;  %v2552_v36 = vunpack.c.l.bf16 %v2672_v33  ;;  %v2553_v37 = vunpack.c.h.bf16 %v2672_v33 }
  0xfc   :  { %574 = vmatmul.bf16.gmra.mxu0 %v2221_v34  ;;  %v2507_v34 = vld [vmem:[#allocation9 + $0x48] sm:$0xff] }
  0xfd   :  { %663 = vmatmul.bf16.gmra.mxu1 %v2225_v35  ;;  %v855_v46 = vmul.f32 %v2540_v41, %v625_v40  ;;  %1156 = vmatmul.bf16.gmra.mxu2 %v2507_v34  ;;  %v1117_v41 = vpop.f32.mrf.mxu2 }
 0x101   :  { %v537_v43 = vpop.f32.mrf.mxu0 }
 0x102   :  { %v626_v44 = vpop.f32.mrf.mxu1 }
 0x103   :  { %v627_v45 = vadd.f32 %v626_v44, %v537_v43 }
 0x105   :  { %v856_v47 = vmul.f32 %v2541_v42, %v627_v45 }
 0x107   :  { %v883_v52 = vpack.c.bf16 %v856_v47, %v855_v46  ;;  %v1119_v47 = vpop.f32.mrf.mxu2 }
 0x109   :  { %1268 = vmatmul.bf16.gmra.mxu3 %v883_v52  ;;  %v540_v55 = vpop.f32.mrf.mxu0  ;;  %v2557_v52 = vunpack.c.h.bf16 %v2673_v48 }
 0x10a   :  { %v629_v56 = vpop.f32.mrf.mxu1 }
 0x10b   :  { %v630_v59 = vadd.f32 %v629_v56, %v540_v55 }
 0x10c   :  { %579 = vmatmul.bf16.gmra.mxu0 %v2229_v53 }
 0x10d   :  { %668 = vmatmul.bf16.gmra.mxu1 %v2233_v54  ;;  %v857_v1 = vmul.f32 %v2544_v60, %v630_v59  ;;  %1161 = vmatmul.bf16.gmra.mxu2 %v2508_v49 }
 0x10f   :  { %v1122_v56 = vpop.f32.mrf.mxu2 }
 0x111   :  { %v542_v62 = vpop.f32.mrf.mxu0 }
 0x112   :  { %v631_v63 = vpop.f32.mrf.mxu1 }
 0x113   :  { %v632_v0 = vadd.f32 %v631_v63, %v542_v62 }
 0x115   :  { %v858_v2 = vmul.f32 %v2545_v61, %v632_v0 }
 0x117   :  { %v884_v7 = vpack.c.bf16 %v858_v2, %v857_v1  ;;  %v1124_v63 = vpop.f32.mrf.mxu2  ;;  %v2674_v1 = vld [vmem:[#allocation8 + $0x48] sm:$0xff]   ;;  %v2509_v2 = vld [vmem:[#allocation9 + $0x58] sm:$0xff] }
 0x118   :  { %v2560_v4 = vunpack.c.l.bf16 %v2674_v1  ;;  %v2561_v5 = vunpack.c.h.bf16 %v2674_v1 }
 0x119   :  { %1273 = vmatmul.bf16.gmra.mxu3 %v884_v7  ;;  %v545_v10 = vpop.f32.mrf.mxu0 }
 0x11a   :  { %v634_v11 = vpop.f32.mrf.mxu1 }
 0x11b   :  { %v635_v14 = vadd.f32 %v634_v11, %v545_v10 }
 0x11c   :  { %584 = vmatmul.bf16.gmra.mxu0 %v2237_v8 }
 0x11d   :  { %673 = vmatmul.bf16.gmra.mxu1 %v2241_v9  ;;  %v859_v21 = vmul.f32 %v2548_v15, %v635_v14  ;;  %1166 = vmatmul.bf16.gmra.mxu2 %v2509_v2 }
 0x11f   :  { %v1127_v10 = vpop.f32.mrf.mxu2 }
 0x121   :  { %v547_v17 = vpop.f32.mrf.mxu0 }
 0x122   :  { %v636_v18 = vpop.f32.mrf.mxu1 }
 0x123   :  { %v637_v19 = vadd.f32 %v636_v18, %v547_v17 }
 0x125   :  { %v860_v22 = vmul.f32 %v2549_v16, %v637_v19 }
 0x127   :  { %v885_v27 = vpack.c.bf16 %v860_v22, %v859_v21  ;;  %v1129_v18 = vpop.f32.mrf.mxu2  ;;  %v2510_v21 = vld [vmem:[#allocation9 + $0x60] sm:$0xff] }
 0x129   :  { %1278 = vmatmul.bf16.gmra.mxu3 %v885_v27  ;;  %v550_v30 = vpop.f32.mrf.mxu0 }
 0x12a   :  { %v639_v31 = vpop.f32.mrf.mxu1 }
 0x12b   :  { %v640_v35 = vadd.f32 %v639_v31, %v550_v30 }
 0x12c   :  { %589 = vmatmul.bf16.gmra.mxu0 %v2245_v28 }
 0x12d   :  { %678 = vmatmul.bf16.gmra.mxu1 %v2249_v29  ;;  %v861_v42 = vmul.f32 %v2552_v36, %v640_v35  ;;  %1171 = vmatmul.bf16.gmra.mxu2 %v2510_v21 }
 0x12f   :  { %v1132_v29 = vpop.f32.mrf.mxu2 }
 0x131   :  { %v552_v38 = vpop.f32.mrf.mxu0 }
 0x132   :  { %v641_v39 = vpop.f32.mrf.mxu1 }
 0x133   :  { %v642_v40 = vadd.f32 %v641_v39, %v552_v38  ;;  %v2676_v39 = vld [vmem:[#allocation8 + $0x58] sm:$0xff]  }
 0x135   :  { %v862_v43 = vmul.f32 %v2553_v37, %v642_v40  ;;  %v2511_v40 = vld [vmem:[#allocation9 + $0x68] sm:$0xff] }
 0x137   :  { %v886_v44 = vpack.c.bf16 %v862_v43, %v861_v42  ;;  %v1134_v37 = vpop.f32.mrf.mxu2  ;;  %v2568_v42 = vunpack.c.l.bf16 %v2676_v39  ;;  %v2569_v43 = vunpack.c.h.bf16 %v2676_v39 }
 0x139   :  { %1283 = vmatmul.bf16.gmra.mxu3 %v886_v44  ;;  %v555_v45 = vpop.f32.mrf.mxu0 }
 0x13a   :  { %v644_v46 = vpop.f32.mrf.mxu1 }
 0x13b   :  { %v645_v50 = vadd.f32 %v644_v46, %v555_v45 }
 0x13d   :  { %v863_v57 = vmul.f32 %v2556_v51, %v645_v50  ;;  %1176 = vmatmul.bf16.gmra.mxu2 %v2511_v40 }
 0x13f   :  { %v1137_v48 = vpop.f32.mrf.mxu2 }
 0x141   :  { %v557_v53 = vpop.f32.mrf.mxu0 }
 0x142   :  { %v646_v54 = vpop.f32.mrf.mxu1 }
 0x143   :  { %v647_v55 = vadd.f32 %v646_v54, %v557_v53 }
 0x145   :  { %v864_v58 = vmul.f32 %v2557_v52, %v647_v55 }
 0x147   :  { %v887_v59 = vpack.c.bf16 %v864_v58, %v863_v57  ;;  %v2677_v58 = vld [vmem:[#allocation8 + $0x60] sm:$0xff]  }
 0x149   :  { %1288 = vmatmul.bf16.gmra.mxu3 %v887_v59  ;;  %v560_v60 = vpop.f32.mrf.mxu0  ;;  %v2512_v59 = vld [vmem:[#allocation9 + $0x70] sm:$0xff] }
 0x14a   :  { %v649_v61 = vpop.f32.mrf.mxu1 }
 0x14b   :  { %v650_v3 = vadd.f32 %v649_v61, %v560_v60  ;;  %v2572_v61 = vunpack.c.l.bf16 %v2677_v58 }
 0x14c   :  { %v1249_v62 = vpop.f32.mrf.mxu3 }
 0x14d   :  { %v3028_v0 = vadd.f32 %v1249_v62, %v1112_v20  ;;  %v865_v11 = vmul.f32 %v2560_v4, %v650_v3  ;;  %v2675_v20 = vld [vmem:[#allocation8 + $0x50] sm:$0xff]   ;;  %v2573_v62 = vunpack.c.h.bf16 %v2677_v58  ;;  %1181 = vmatmul.bf16.gmra.mxu2 %v2512_v59 }
 0x14e   :  { %v2564_v23 = vunpack.c.l.bf16 %v2675_v20  ;;  %v2565_v24 = vunpack.c.h.bf16 %v2675_v20 }
 0x14f   :  { %1329 = vadd.xlane.f32.xlu0 %v3028_v0 }
 0x151   :  { %v562_v6 = vpop.f32.mrf.mxu0 }
 0x152   :  { %v651_v7 = vpop.f32.mrf.mxu1 }
 0x153   :  { %v652_v8 = vadd.f32 %v651_v7, %v562_v6 }
 0x154   :  { %v1251_v9 = vpop.f32.mrf.mxu3 }
 0x155   :  { %v866_v12 = vmul.f32 %v2561_v5, %v652_v8  ;;  %v3031_v13 = vadd.f32 %v1251_v9, %v1114_v32 }
 0x157   :  { %1331 = vadd.xlane.f32.xlu0 %v3031_v13  ;;  %v888_v14 = vpack.c.bf16 %v866_v12, %v865_v11 }
 0x159   :  { %1293 = vmatmul.bf16.gmra.mxu3 %v888_v14  ;;  %v565_v15 = vpop.f32.mrf.mxu0  ;;  %v2678_v14 = vld [vmem:[#allocation8 + $0x68] sm:$0xff]  }
 0x15a   :  { %v654_v16 = vpop.f32.mrf.mxu1  ;;  %v2576_v20 = vunpack.c.l.bf16 %v2678_v14  ;;  %v2577_v21 = vunpack.c.h.bf16 %v2678_v14 }
 0x15b   :  { %v655_v22 = vadd.f32 %v654_v16, %v565_v15  ;;  %v2513_v16 = vld [vmem:[#allocation9 + $0x78] sm:$0xff] }
 0x15c   :  { %v1254_v17 = vpop.f32.mrf.mxu3 }
 0x15d   :  { %v3034_v19 = vadd.f32 %v1254_v17, %v1117_v41  ;;  %v867_v30 = vmul.f32 %v2564_v23, %v655_v22  ;;  %1186 = vmatmul.bf16.gmra.mxu2 %v2513_v16 }
 0x15f   :  { %1333 = vadd.xlane.f32.xlu1 %v3034_v19 }
 0x161   :  { %v567_v25 = vpop.f32.mrf.mxu0 }
 0x162   :  { %v656_v26 = vpop.f32.mrf.mxu1 }
 0x163   :  { %v657_v27 = vadd.f32 %v656_v26, %v567_v25 }
 0x164   :  { %v1256_v28 = vpop.f32.mrf.mxu3 }
 0x165   :  { %v868_v31 = vmul.f32 %v2565_v24, %v657_v27  ;;  %v3037_v32 = vadd.f32 %v1256_v28, %v1119_v47 }
 0x167   :  { %1335 = vadd.xlane.f32.xlu1 %v3037_v32  ;;  %v889_v33 = vpack.c.bf16 %v868_v31, %v867_v30 }
 0x169   :  { %1298 = vmatmul.bf16.gmra.mxu3 %v889_v33  ;;  %v570_v34 = vpop.f32.mrf.mxu0 }
 0x16a   :  { %v659_v35 = vpop.f32.mrf.mxu1 }
 0x16b   :  { %v660_v41 = vadd.f32 %v659_v35, %v570_v34  ;;  %v2679_v35 = vld [vmem:[#allocation8 + $0x70] sm:$0xff]  }
 0x16c   :  { %v1259_v36 = vpop.f32.mrf.mxu3  ;;  %v2580_v39 = vunpack.c.l.bf16 %v2679_v35  ;;  %v2581_v40 = vunpack.c.h.bf16 %v2679_v35 }
 0x16d   :  { %v3040_v38 = vadd.f32 %v1259_v36, %v1122_v56  ;;  %v869_v49 = vmul.f32 %v2568_v42, %v660_v41  ;;  %v1139_v56 = vpop.f32.mrf.mxu2 }
 0x16f   :  { %1337 = vadd.xlane.f32.xlu2 %v3040_v38 }
 0x171   :  { %v572_v44 = vpop.f32.mrf.mxu0 }
 0x172   :  { %v661_v45 = vpop.f32.mrf.mxu1 }
 0x173   :  { %v662_v46 = vadd.f32 %v661_v45, %v572_v44 }
 0x174   :  { %v1261_v47 = vpop.f32.mrf.mxu3 }
 0x175   :  { %v870_v50 = vmul.f32 %v2569_v43, %v662_v46  ;;  %v3043_v51 = vadd.f32 %v1261_v47, %v1124_v63  ;;  %v1142_v7 = vpop.f32.mrf.mxu2 }
 0x177   :  { %1339 = vadd.xlane.f32.xlu2 %v3043_v51  ;;  %v890_v52 = vpack.c.bf16 %v870_v50, %v869_v49 }
 0x179   :  { %1303 = vmatmul.bf16.gmra.mxu3 %v890_v52  ;;  %v575_v53 = vpop.f32.mrf.mxu0 }
 0x17a   :  { %v664_v54 = vpop.f32.mrf.mxu1 }
 0x17b   :  { %v665_v60 = vadd.f32 %v664_v54, %v575_v53  ;;  %v2680_v54 = vld [vmem:[#allocation8 + $0x78] sm:$0xff]  }
 0x17c   :  { %v1264_v55 = vpop.f32.mrf.mxu3  ;;  %v2584_v59 = vunpack.c.l.bf16 %v2680_v54 }
 0x17d   :  { %v3046_v57 = vadd.f32 %v1264_v55, %v1127_v10  ;;  %v871_v4 = vmul.f32 %v2572_v61, %v665_v60  ;;  %v1144_v15 = vpop.f32.mrf.mxu2  ;;  %v2585_v60 = vunpack.c.h.bf16 %v2680_v54 }
 0x17f   :  { %1341 = vadd.xlane.f32.xlu0 %v3046_v57 }
 0x181   :  { %v577_v63 = vpop.f32.mrf.mxu0 }
 0x182   :  { %v666_v1 = vpop.f32.mrf.mxu1 }
 0x183   :  { %v667_v2 = vadd.f32 %v666_v1, %v577_v63 }
 0x184   :  { %v1266_v3 = vpop.f32.mrf.mxu3 }
 0x185   :  { %v872_v5 = vmul.f32 %v2573_v62, %v667_v2  ;;  %v3049_v6 = vadd.f32 %v1266_v3, %v1129_v18 }
 0x187   :  { %1343 = vadd.xlane.f32.xlu1 %v3049_v6  ;;  %v891_v8 = vpack.c.bf16 %v872_v5, %v871_v4 }
 0x189   :  { %1308 = vmatmul.bf16.gmra.mxu3 %v891_v8  ;;  %v580_v9 = vpop.f32.mrf.mxu0  ;;  %v1425_v8 = vlaneseq }
 0x18a   :  { %v669_v10 = vpop.f32.mrf.mxu1 }
 0x18b   :  { %v670_v17 = vadd.f32 %v669_v10, %v580_v9  ;;  %v3073_v10 = vand.u32 127, %v1425_v8 }
 0x18c   :  { %v1269_v11 = vpop.f32.mrf.mxu3 }
 0x18d   :  { %v3052_v12 = vadd.f32 %v1269_v11, %v1132_v29  ;;  %v873_v25 = vmul.f32 %v2576_v20, %v670_v17  ;;  %v1147_v29 = vpop.f32.mrf.mxu2  ;;  %vm1427_vm0 = vcmp.lt.s32.totalorder %v3073_v10, 32 }
 0x18f   :  { %1345 = vadd.xlane.f32.xlu2 %v3052_v12 }
 0x191   :  { %v582_v18 = vpop.f32.mrf.mxu0 }
 0x192   :  { %v671_v22 = vpop.f32.mrf.mxu1 }
 0x193   :  { %v672_v23 = vadd.f32 %v671_v22, %v582_v18 }
 0x194   :  { %v1271_v24 = vpop.f32.mrf.mxu3 }
 0x195   :  { %v874_v26 = vmul.f32 %v2577_v21, %v672_v23  ;;  %v3055_v27 = vadd.f32 %v1271_v24, %v1134_v37  ;;  %v1149_v44 = vpop.f32.mrf.mxu2 }
 0x197   :  { %1347 = vadd.xlane.f32.xlu0 %v3055_v27  ;;  %v892_v28 = vpack.c.bf16 %v874_v26, %v873_v25 }
 0x199   :  { %1313 = vmatmul.bf16.gmra.mxu3 %v892_v28  ;;  %v585_v30 = vpop.f32.mrf.mxu0 }
 0x19a   :  { %v674_v31 = vpop.f32.mrf.mxu1 }
 0x19b   :  { %v675_v36 = vadd.f32 %v674_v31, %v585_v30 }
 0x19c   :  { %v1274_v33 = vpop.f32.mrf.mxu3 }
 0x19d   :  { %v3058_v34 = vadd.f32 %v1274_v33, %v1137_v48  ;;  %v875_v45 = vmul.f32 %v2580_v39, %v675_v36  ;;  %v1152_v55 = vpop.f32.mrf.mxu2 }
 0x19f   :  { %1349 = vadd.xlane.f32.xlu1 %v3058_v34 }
 0x1a1   :  { %v587_v41 = vpop.f32.mrf.mxu0 }
 0x1a2   :  { %v676_v42 = vpop.f32.mrf.mxu1 }
 0x1a3   :  { %v677_v37 = vadd.f32 %v676_v42, %v587_v41 }
 0x1a4   :  { %v1276_v43 = vpop.f32.mrf.mxu3 }
 0x1a5   :  { %v876_v46 = vmul.f32 %v2581_v40, %v677_v37  ;;  %v3061_v47 = vadd.f32 %v1276_v43, %v1139_v56  ;;  %v1154_v5 = vpop.f32.mrf.mxu2 }
 0x1a7   :  { %1351 = vadd.xlane.f32.xlu2 %v3061_v47  ;;  %v893_v49 = vpack.c.bf16 %v876_v46, %v875_v45 }
 0x1a9   :  { %1318 = vmatmul.bf16.gmra.mxu3 %v893_v49  ;;  %v590_v48 = vpop.f32.mrf.mxu0 }
 0x1aa   :  { %v679_v50 = vpop.f32.mrf.mxu1 }
 0x1ab   :  { %v680_v58 = vadd.f32 %v679_v50, %v590_v48 }
 0x1ac   :  { %v1279_v52 = vpop.f32.mrf.mxu3 }
 0x1ad   :  { %v3064_v53 = vadd.f32 %v1279_v52, %v1142_v7  ;;  %v877_v1 = vmul.f32 %v2584_v59, %v680_v58  ;;  %v1157_v14 = vpop.f32.mrf.mxu2 }
 0x1af   :  { %1353 = vadd.xlane.f32.xlu0 %v3064_v53 }
 0x1b1   :  { %v592_v61 = vpop.f32.mrf.mxu0 }
 0x1b2   :  { %v681_v62 = vpop.f32.mrf.mxu1 }
 0x1b3   :  { %v682_v56 = vadd.f32 %v681_v62, %v592_v61 }
 0x1b4   :  { %v1281_v63 = vpop.f32.mrf.mxu3 }
 0x1b5   :  { %v878_v2 = vmul.f32 %v2585_v60, %v682_v56  ;;  %v3067_v3 = vadd.f32 %v1281_v63, %v1144_v15  ;;  %v1159_v25 = vpop.f32.mrf.mxu2 }
 0x1b7   :  { %1355 = vadd.xlane.f32.xlu1 %v3067_v3  ;;  %v894_v4 = vpack.c.bf16 %v878_v2, %v877_v1 }
 0x1b9   :  { %1323 = vmatmul.bf16.gmra.mxu3 %v894_v4 }
 0x1bc   :  { %v1284_v7 = vpop.f32.mrf.mxu3 }
 0x1bd   :  { %v3070_v9 = vadd.f32 %v1284_v7, %v1147_v29 }
 0x1bf   :  { %1357 = vadd.xlane.f32.xlu2 %v3070_v9 }
 0x1c2   :  { %v1330_v11 = vpop.xlane.xlu0 %1329 }
 0x1c3   :  { %v1393_v16 = vmul.f32 0.03125, %v1330_v11 }
 0x1c4   :  { %v1286_v17 = vpop.f32.mrf.mxu3 }
 0x1c5   :  { %v1428_v15 = vsub.f32 %v3028_v0, %v1393_v16  ;;  %v3077_v20 = vadd.f32 %v1286_v17, %v1149_v44 }
 0x1c7   :  { %1359 = vadd.xlane.f32.xlu0 %v3077_v20  ;;  %v3082_v21 = vsel %vm1427_vm0, %v1428_v15, 0.0 }
 0x1c8   :  { %v1492_v18 = vmul.f32 %v3082_v21, %v3082_v21 }
 0x1ca   :  { %1524 = vadd.xlane.f32.xlu2 %v1492_v18  ;;  %v1332_v22 = vpop.xlane.xlu0 %1331 }
 0x1cb   :  { %v1394_v23 = vmul.f32 0.03125, %v1332_v22 }
 0x1cc   :  { %v1289_v24 = vpop.f32.mrf.mxu3 }
 0x1cd   :  { %v1429_v26 = vsub.f32 %v3031_v13, %v1394_v23  ;;  %v3087_v28 = vadd.f32 %v1289_v24, %v1152_v55  ;;  %v1162_v13 = vpop.f32.mrf.mxu2 }
 0x1cf   :  { %1361 = vadd.xlane.f32.xlu1 %v3087_v28  ;;  %v3092_v0 = vsel %vm1427_vm0, %v1429_v26, 0.0 }
 0x1d0   :  { %v1493_v29 = vmul.f32 %v3092_v0, %v3092_v0 }
 0x1d2   :  { %v1334_v30 = vpop.xlane.xlu1 %1333  ;;  %1526 = vadd.xlane.f32.xlu0 %v1493_v29 }
 0x1d3   :  { %v1395_v31 = vmul.f32 0.03125, %v1334_v30 }
 0x1d4   :  { %v1291_v33 = vpop.f32.mrf.mxu3 }
 0x1d5   :  { %v1430_v35 = vsub.f32 %v3034_v19, %v1395_v31  ;;  %v3097_v36 = vadd.f32 %v1291_v33, %v1154_v5  ;;  %v1164_v46 = vpop.f32.mrf.mxu2 }
 0x1d7   :  { %1363 = vadd.xlane.f32.xlu2 %v3097_v36  ;;  %v3102_v39 = vsel %vm1427_vm0, %v1430_v35, 0.0 }
 0x1d8   :  { %v1494_v40 = vmul.f32 %v3102_v39, %v3102_v39 }
 0x1da   :  { %1528 = vadd.xlane.f32.xlu1 %v1494_v40  ;;  %v1336_v41 = vpop.xlane.xlu1 %1335 }
 0x1db   :  { %v1396_v42 = vmul.f32 0.03125, %v1336_v41 }
 0x1dc   :  { %v1294_v37 = vpop.f32.mrf.mxu3 }
 0x1dd   :  { %v1431_v43 = vsub.f32 %v3037_v32, %v1396_v42  ;;  %v3107_v44 = vadd.f32 %v1294_v37, %v1157_v14  ;;  %v1167_v59 = vpop.f32.mrf.mxu2 }
 0x1df   :  { %1365 = vadd.xlane.f32.xlu0 %v3107_v44  ;;  %v3112_v19 = vsel %vm1427_vm0, %v1431_v43, 0.0 }
 0x1e0   :  { %v1495_v45 = vmul.f32 %v3112_v19, %v3112_v19 }
 0x1e2   :  { %v1338_v49 = vpop.xlane.xlu2 %1337  ;;  %1530 = vadd.xlane.f32.xlu2 %v1495_v45 }
 0x1e3   :  { %v1397_v48 = vmul.f32 0.03125, %v1338_v49 }
 0x1e4   :  { %v1296_v50 = vpop.f32.mrf.mxu3 }
 0x1e5   :  { %v1432_v52 = vsub.f32 %v3040_v38, %v1397_v48  ;;  %v3117_v54 = vadd.f32 %v1296_v50, %v1159_v25  ;;  %v1169_v5 = vpop.f32.mrf.mxu2 }
 0x1e7   :  { %1367 = vadd.xlane.f32.xlu1 %v3117_v54  ;;  %v3122_v32 = vsel %vm1427_vm0, %v1432_v52, 0.0 }
 0x1e8   :  { %v1496_v55 = vmul.f32 %v3122_v32, %v3122_v32 }
 0x1ea   :  { %v1340_v58 = vpop.xlane.xlu2 %1339  ;;  %1532 = vadd.xlane.f32.xlu0 %v1496_v55 }
 0x1eb   :  { %v1398_v60 = vmul.f32 0.03125, %v1340_v58 }
 0x1ec   :  { %v1299_v61 = vpop.f32.mrf.mxu3 }
 0x1ed   :  { %v1433_v62 = vsub.f32 %v3043_v51, %v1398_v60  ;;  %v3127_v56 = vadd.f32 %v1299_v61, %v1162_v13 }
 0x1ef   :  { %1369 = vadd.xlane.f32.xlu2 %v3127_v56  ;;  %v3132_v38 = vsel %vm1427_vm0, %v1433_v62, 0.0 }
 0x1f0   :  { %v1497_v63 = vmul.f32 %v3132_v38, %v3132_v38 }
 0x1f2   :  { %1534 = vadd.xlane.f32.xlu1 %v1497_v63  ;;  %v1342_v1 = vpop.xlane.xlu0 %1341 }
 0x1f3   :  { %v1399_v2 = vmul.f32 0.03125, %v1342_v1 }
 0x1f4   :  { %v1301_v4 = vpop.f32.mrf.mxu3 }
 0x1f5   :  { %v1434_v7 = vsub.f32 %v3046_v57, %v1399_v2  ;;  %v3137_v8 = vadd.f32 %v1301_v4, %v1164_v46  ;;  %v1172_v57 = vpop.f32.mrf.mxu2 }
 0x1f7   :  { %1371 = vadd.xlane.f32.xlu0 %v3137_v8  ;;  %v3142_v51 = vsel %vm1427_vm0, %v1434_v7, 0.0 }
 0x1f8   :  { %v1498_v11 = vmul.f32 %v3142_v51, %v3142_v51 }
 0x1fa   :  { %v1344_v14 = vpop.xlane.xlu1 %1343  ;;  %1536 = vadd.xlane.f32.xlu2 %v1498_v11 }
 0x1fb   :  { %v1400_v16 = vmul.f32 0.03125, %v1344_v14 }
 0x1fc   :  { %v1304_v17 = vpop.f32.mrf.mxu3 }
 0x1fd   :  { %v1435_v15 = vsub.f32 %v3049_v6, %v1400_v16  ;;  %v3147_v18 = vadd.f32 %v1304_v17, %v1167_v59  ;;  %v1174_v33 = vpop.f32.mrf.mxu2 }
 0x1ff   :  { %1373 = vadd.xlane.f32.xlu1 %v3147_v18  ;;  %v3152_v22 = vsel %vm1427_vm0, %v1435_v15, 0.0 }
 0x200   :  { %v1499_v23 = vmul.f32 %v3152_v22, %v3152_v22 }
 0x202   :  { %v1346_v24 = vpop.xlane.xlu2 %1345  ;;  %1538 = vadd.xlane.f32.xlu0 %v1499_v23 }
 0x203   :  { %v1401_v25 = vmul.f32 0.03125, %v1346_v24 }
 0x204   :  { %v1306_v26 = vpop.f32.mrf.mxu3 }
 0x205   :  { %v1436_v29 = vsub.f32 %v3052_v12, %v1401_v25  ;;  %v3157_v30 = vadd.f32 %v1306_v26, %v1169_v5  ;;  %v1177_v45 = vpop.f32.mrf.mxu2 }
 0x207   :  { %1375 = vadd.xlane.f32.xlu2 %v3157_v30  ;;  %v3162_v6 = vsel %vm1427_vm0, %v1436_v29, 0.0 }
 0x208   :  { %v1500_v31 = vmul.f32 %v3162_v6, %v3162_v6 }
 0x20a   :  { %1540 = vadd.xlane.f32.xlu1 %v1500_v31  ;;  %v1348_v35 = vpop.xlane.xlu0 %1347 }
 0x20b   :  { %v1402_v13 = vmul.f32 0.03125, %v1348_v35 }
 0x20c   :  { %v1309_v40 = vpop.f32.mrf.mxu3 }
 0x20d   :  { %v1437_v41 = vsub.f32 %v3055_v27, %v1402_v13  ;;  %v3167_v42 = vadd.f32 %v1309_v40, %v1172_v57  ;;  %v1179_v59 = vpop.f32.mrf.mxu2 }
 0x20f   :  { %1377 = vadd.xlane.f32.xlu0 %v3167_v42  ;;  %v3172_v12 = vsel %vm1427_vm0, %v1437_v41, 0.0 }
 0x210   :  { %v1501_v37 = vmul.f32 %v3172_v12, %v3172_v12 }
 0x212   :  { %v1350_v43 = vpop.xlane.xlu1 %1349  ;;  %1542 = vadd.xlane.f32.xlu2 %v1501_v37 }
 0x213   :  { %v1403_v46 = vmul.f32 0.03125, %v1350_v43 }
 0x214   :  { %v1311_v49 = vpop.f32.mrf.mxu3 }
 0x215   :  { %v1438_v48 = vsub.f32 %v3058_v34, %v1403_v46  ;;  %v3177_v50 = vadd.f32 %v1311_v49, %v1174_v33 }
 0x217   :  { %1379 = vadd.xlane.f32.xlu1 %v3177_v50  ;;  %v3182_v27 = vsel %vm1427_vm0, %v1438_v48, 0.0 }
 0x218   :  { %v1502_v52 = vmul.f32 %v3182_v27, %v3182_v27 }
 0x21a   :  { %v1352_v55 = vpop.xlane.xlu2 %1351  ;;  %1544 = vadd.xlane.f32.xlu0 %v1502_v52 }
 0x21b   :  { %v1404_v58 = vmul.f32 0.03125, %v1352_v55 }
 0x21c   :  { %v1314_v60 = vpop.f32.mrf.mxu3 }
 0x21d   :  { %v1439_v61 = vsub.f32 %v3061_v47, %v1404_v58  ;;  %v3187_v62 = vadd.f32 %v1314_v60, %v1177_v45  ;;  %v1182_v47 = vpop.f32.mrf.mxu2 }
 0x21f   :  { %1381 = vadd.xlane.f32.xlu2 %v3187_v62  ;;  %v3192_v34 = vsel %vm1427_vm0, %v1439_v61, 0.0 }
 0x220   :  { %v1503_v63 = vmul.f32 %v3192_v34, %v3192_v34 }
 0x222   :  { %1546 = vadd.xlane.f32.xlu1 %v1503_v63  ;;  %v1354_v1 = vpop.xlane.xlu0 %1353 }
 0x223   :  { %v1405_v2 = vmul.f32 0.03125, %v1354_v1 }
 0x224   :  { %v1316_v4 = vpop.f32.mrf.mxu3 }
 0x225   :  { %v1440_v5 = vsub.f32 %v3064_v53, %v1405_v2  ;;  %v3197_v7 = vadd.f32 %v1316_v4, %v1179_v59  ;;  %v1184_v24 = vpop.f32.mrf.mxu2 }
 0x227   :  { %1383 = vadd.xlane.f32.xlu0 %v3197_v7  ;;  %v3202_v11 = vsel %vm1427_vm0, %v1440_v5, 0.0 }
 0x228   :  { %v1504_v14 = vmul.f32 %v3202_v11, %v3202_v11 }
 0x22a   :  { %v1356_v16 = vpop.xlane.xlu1 %1355  ;;  %1548 = vadd.xlane.f32.xlu2 %v1504_v14 }
 0x22b   :  { %v1406_v17 = vmul.f32 0.03125, %v1356_v16 }
 0x22c   :  { %v1319_v15 = vpop.f32.mrf.mxu3 }
 0x22d   :  { %v1441_v57 = vsub.f32 %v3067_v3, %v1406_v17  ;;  %v3207_v23 = vadd.f32 %v1319_v15, %v1182_v47  ;;  %v1187_v3 = vpop.f32.mrf.mxu2 }
 0x22f   :  { %1385 = vadd.xlane.f32.xlu1 %v3207_v23  ;;  %v3212_v53 = vsel %vm1427_vm0, %v1441_v57, 0.0 }
 0x230   :  { %v1505_v25 = vmul.f32 %v3212_v53, %v3212_v53 }
 0x232   :  { %1550 = vadd.xlane.f32.xlu0 %v1505_v25  ;;  %v1358_v29 = vpop.xlane.xlu2 %1357 }
 0x233   :  { %v1407_v48 = vmul.f32 0.03125, %v1358_v29 }
 0x234   :  { %v1321_v26 = vpop.f32.mrf.mxu3 }
 0x235   :  { %v3216_v31 = vadd.f32 %v1321_v26, %v1184_v24  ;;  %v1442_v63 = vsub.f32 %v3070_v9, %v1407_v48 }
 0x237   :  { %1387 = vadd.xlane.f32.xlu2 %v3216_v31  ;;  %v3242_v16 = vsel %vm1427_vm0, %v1442_v63, 0.0 }
 0x238   :  { %v1506_v24 = vmul.f32 %v3242_v16, %v3242_v16 }
 0x23a   :  { %v1360_v33 = vpop.xlane.xlu0 %1359 }
 0x23b   :  { %v1408_v35 = vmul.f32 0.03125, %v1360_v33 }
 0x23c   :  { %v1324_v13 = vpop.f32.mrf.mxu3 }
 0x23d   :  { %v1443_v40 = vsub.f32 %v3077_v20, %v1408_v35  ;;  %v3220_v41 = vadd.f32 %v1324_v13, %v1187_v3  ;;  %v1525_v37 = vpop.xlane.xlu2 %1524  ;;  %v1189_v20 = vpop.f32.mrf.mxu2 }
 0x23e   :  { %v1588_v43 = vmul.f32 0.03125, %v1525_v37 }
 0x23f   :  { %1389 = vadd.xlane.f32.xlu0 %v3220_v41  ;;  %v3225_v45 = vsel %vm1427_vm0, %v1443_v40, 0.0 }
 0x240   :  { %v1620_v46 = vadd.f32 1e-05, %v1588_v43  ;;  %v1507_v49 = vmul.f32 %v3225_v45, %v3225_v45 }
 0x242   :  { %2707 = vrsqrt.f32 %v1620_v46  ;;  %v1362_v52 = vpop.xlane.xlu1 %1361  ;;  %1554 = vadd.xlane.f32.xlu2 %v1507_v49  ;;  %vm1658_vm2 = vweird.f32 %v1620_v46 }
 0x243   :  { %v1409_v55 = vmul.f32 0.03125, %v1362_v52 }
 0x244   :  { %v1326_v58 = vpop.f32.mrf.mxu3 }
 0x245   :  { %v1444_v59 = vsub.f32 %v3087_v28, %v1409_v55  ;;  %v3230_v60 = vadd.f32 %v1326_v58, %v1189_v20  ;;  %v1527_v61 = vpop.xlane.xlu0 %1526 }
 0x246   :  { %v1589_v1 = vmul.f32 0.03125, %v1527_v61 }
 0x247   :  { %1391 = vadd.xlane.f32.xlu1 %v3230_v60  ;;  %v3236_v2 = vsel %vm1427_vm0, %v1444_v59, 0.0 }
 0x248   :  { %v2708_v4 = vpop.eup %2707  ;;  %v1621_v5 = vadd.f32 1e-05, %v1589_v1  ;;  %v1508_v47 = vmul.f32 %v3236_v2, %v3236_v2 }
 0x249   :  { %v1653_v14 = vmul.f32 %v2708_v4, %v1620_v46  ;;  %vm1659_vm1 = vweird.f32 %v2708_v4 }
 0x24a   :  { %2709 = vrsqrt.f32 %v1621_v5  ;;  %v1364_v28 = vpop.xlane.xlu2 %1363  ;;  %1556 = vadd.xlane.f32.xlu0 %v1508_v47  ;;  %vm1660_vm3 = vmor %vm1658_vm2, %vm1659_vm1  ;;  %vm1668_vm5 = vweird.f32 %v1621_v5 }
 0x24b   :  { %v1654_v9 = vmul.f32 %v2708_v4, %v1653_v14  ;;  %v1410_v17 = vmul.f32 0.03125, %v1364_v28 }
 0x24d   :  { %v1655_v15 = vmul.f32 0.5, %v1654_v9  ;;  %v1529_v57 = vpop.xlane.xlu1 %1528  ;;  %v1445_v25 = vsub.f32 %v3097_v36, %v1410_v17 }
 0x24e   :  { %v1590_v26 = vmul.f32 0.03125, %v1529_v57 }
 0x24f   :  { %v1656_v29 = vsub.f32 1.5, %v1655_v15  ;;  %1552 = vadd.xlane.f32.xlu1 %v1506_v24  ;;  %v3249_v40 = vsel %vm1427_vm0, %v1445_v25, 0.0 }
 0x250   :  { %v2710_v3 = vpop.eup %2709  ;;  %v1622_v33 = vadd.f32 1e-05, %v1590_v26  ;;  %v1509_v55 = vmul.f32 %v3249_v40, %v3249_v40 }
 0x251   :  { %v1663_v35 = vmul.f32 %v2710_v3, %v1621_v5  ;;  %v1657_v37 = vmul.f32 %v2708_v4, %v1656_v29  ;;  %vm1669_vm4 = vweird.f32 %v2710_v3 }
 0x252   :  { %2711 = vrsqrt.f32 %v1622_v33  ;;  %v1366_v13 = vpop.xlane.xlu0 %1365  ;;  %vm1670_vm6 = vmor %vm1668_vm5, %vm1669_vm4  ;;  %vm1678_vm8 = vweird.f32 %v1622_v33 }
 0x253   :  { %v1664_v43 = vmul.f32 %v2710_v3, %v1663_v35  ;;  %v1411_v49 = vmul.f32 0.03125, %v1366_v13  ;;  %v1661_v58 = vsel %vm1660_vm3, %v2708_v4, %v1657_v37 }
 0x254   :  { %v1972_v14 = vmul.f32 %v1661_v58, %v3082_v21 }
 0x255   :  { %v1665_v48 = vmul.f32 0.5, %v1664_v43  ;;  %v1446_v36 = vsub.f32 %v3107_v44, %v1411_v49  ;;  %v1531_v52 = vpop.xlane.xlu2 %1530 }
 0x256   :  { %v1591_v20 = vmul.f32 0.03125, %v1531_v52  ;;  %v2004_v26 = vmax.f32 %v1972_v14, 0.0 }
 0x257   :  { %v1666_v59 = vsub.f32 1.5, %v1665_v48  ;;  %1558 = vadd.xlane.f32.xlu1 %v1509_v55  ;;  %v3256_v61 = vsel %vm1427_vm0, %v1446_v36, 0.0 }
 0x258   :  { %v2712_v63 = vpop.eup %2711  ;;  %v1623_v1 = vadd.f32 1e-05, %v1591_v20  ;;  %v1510_v46 = vmul.f32 %v3256_v61, %v3256_v61 }
 0x259   :  { %v1667_v44 = vmul.f32 %v2710_v3, %v1666_v59  ;;  %v1673_v47 = vmul.f32 %v2712_v63, %v1622_v33  ;;  %vm1679_vm7 = vweird.f32 %v2712_v63 }
 0x25a   :  { %2713 = vrsqrt.f32 %v1623_v1  ;;  %v1368_v4 = vpop.xlane.xlu1 %1367  ;;  %1560 = vadd.xlane.f32.xlu2 %v1510_v46  ;;  %vm1680_vm9 = vmor %vm1678_vm8, %vm1679_vm7  ;;  %vm1688_vm11 = vweird.f32 %v1623_v1 }
 0x25b   :  { %v1671_v28 = vsel %vm1670_vm6, %v2710_v3, %v1667_v44  ;;  %v1674_v9 = vmul.f32 %v2712_v63, %v1673_v47  ;;  %v1412_v17 = vmul.f32 0.03125, %v1368_v4 }
 0x25c   :  { %v1973_v15 = vmul.f32 %v1671_v28, %v3092_v0 }
 0x25d   :  { %v1675_v57 = vmul.f32 0.5, %v1674_v9  ;;  %v1447_v24 = vsub.f32 %v3117_v54, %v1412_v17  ;;  %v1533_v25 = vpop.xlane.xlu0 %1532 }
 0x25e   :  { %v2005_v29 = vmax.f32 %v1973_v15, 0.0  ;;  %v1592_v35 = vmul.f32 0.03125, %v1533_v25 }
 0x25f   :  { %v1676_v5 = vsub.f32 1.5, %v1675_v57  ;;  %v3265_v21 = vsel %vm1427_vm0, %v1447_v24, 0.0 }
 0x260   :  { %v2714_v13 = vpop.eup %2713  ;;  %v2589_v37 = vpack.c.bf16 %v2005_v29, %v2004_v26  ;;  %v1624_v43 = vadd.f32 1e-05, %v1592_v35  ;;  %v1511_v3 = vmul.f32 %v3265_v21, %v3265_v21 }
 0x261   :  { %v1683_v49 = vmul.f32 %v2714_v13, %v1623_v1  ;;  %v1677_v54 = vmul.f32 %v2712_v63, %v1676_v5  ;;  %vm1689_vm10 = vweird.f32 %v2714_v13 }
 0x262   :  { %2590 = vst [vmem:[#allocation14] sm:$0xff] %v2589_v37   ;;  %2715 = vrsqrt.f32 %v1624_v43  ;;  %v1370_v0 = vpop.xlane.xlu2 %1369  ;;  %1562 = vadd.xlane.f32.xlu0 %v1511_v3  ;;  %vm1690_vm12 = vmor %vm1688_vm11, %vm1689_vm10  ;;  %vm1698_vm14 = vweird.f32 %v1624_v43 }
 0x263   :  { %v1684_v48 = vmul.f32 %v2714_v13, %v1683_v49  ;;  %v1413_v36 = vmul.f32 0.03125, %v1370_v0  ;;  %v1681_v59 = vsel %vm1680_vm9, %v2712_v63, %v1677_v54 }
 0x265   :  { %v1685_v52 = vmul.f32 0.5, %v1684_v48  ;;  %v1448_v55 = vsub.f32 %v3127_v56, %v1413_v36  ;;  %v1535_v20 = vpop.xlane.xlu1 %1534  ;;  %v1974_v56 = vmul.f32 %v1681_v59, %v3102_v39 }
 0x266   :  { %v1593_v58 = vmul.f32 0.03125, %v1535_v20 }
 0x267   :  { %v1686_v46 = vsub.f32 1.5, %v1685_v52  ;;  %v3272_v44 = vsel %vm1427_vm0, %v1448_v55, 0.0  ;;  %v2006_v29 = vmax.f32 %v1974_v56, 0.0 }
 0x268   :  { %v2716_v47 = vpop.eup %2715  ;;  %v1625_v14 = vadd.f32 1e-05, %v1593_v58  ;;  %v1512_v4 = vmul.f32 %v3272_v44, %v3272_v44 }
 0x269   :  { %v1687_v28 = vmul.f32 %v2714_v13, %v1686_v46  ;;  %v1693_v33 = vmul.f32 %v2716_v47, %v1624_v43  ;;  %vm1699_vm13 = vweird.f32 %v2716_v47 }
 0x26a   :  { %2717 = vrsqrt.f32 %v1625_v14  ;;  %1564 = vadd.xlane.f32.xlu1 %v1512_v4  ;;  %v1372_v63 = vpop.xlane.xlu0 %1371  ;;  %vm1700_vm15 = vmor %vm1698_vm14, %vm1699_vm13  ;;  %vm1708_vm2 = vweird.f32 %v1625_v14 }
 0x26b   :  { %v1691_v9 = vsel %vm1690_vm12, %v2714_v13, %v1687_v28  ;;  %v1694_v17 = vmul.f32 %v2716_v47, %v1693_v33  ;;  %v1414_v15 = vmul.f32 0.03125, %v1372_v63 }
 0x26c   :  { %v1975_v57 = vmul.f32 %v1691_v9, %v3112_v19 }
 0x26d   :  { %v1695_v24 = vmul.f32 0.5, %v1694_v17  ;;  %v1449_v25 = vsub.f32 %v3137_v8, %v1414_v15  ;;  %v1537_v26 = vpop.xlane.xlu2 %1536 }
 0x26e   :  { %v2007_v35 = vmax.f32 %v1975_v57, 0.0  ;;  %v1594_v5 = vmul.f32 0.03125, %v1537_v26 }
 0x26f   :  { %v1696_v1 = vsub.f32 1.5, %v1695_v24  ;;  %v3281_v39 = vsel %vm1427_vm0, %v1449_v25, 0.0 }
 0x270   :  { %v2718_v37 = vpop.eup %2717  ;;  %v2594_v3 = vpack.c.bf16 %v2007_v35, %v2006_v29  ;;  %v1626_v49 = vadd.f32 1e-05, %v1594_v5  ;;  %v1513_v13 = vmul.f32 %v3281_v39, %v3281_v39 }
 0x271   :  { %v1703_v0 = vmul.f32 %v2718_v37, %v1625_v14  ;;  %v1697_v8 = vmul.f32 %v2716_v47, %v1696_v1  ;;  %vm1709_vm1 = vweird.f32 %v2718_v37 }
 0x272   :  { %2681 = vst [vmem:[#allocation14 + $0x8] sm:$0xff] %v2594_v3   ;;  %2719 = vrsqrt.f32 %v1626_v49  ;;  %v1374_v19 = vpop.xlane.xlu1 %1373  ;;  %1566 = vadd.xlane.f32.xlu2 %v1513_v13  ;;  %vm1710_vm3 = vmor %vm1708_vm2, %vm1709_vm1  ;;  %vm1718_vm5 = vweird.f32 %v1626_v49 }
 0x273   :  { %v1704_v54 = vmul.f32 %v2718_v37, %v1703_v0  ;;  %v1415_v48 = vmul.f32 0.03125, %v1374_v19  ;;  %v1701_v58 = vsel %vm1700_vm15, %v2716_v47, %v1697_v8 }
 0x275   :  { %v1705_v36 = vmul.f32 0.5, %v1704_v54  ;;  %v1450_v52 = vsub.f32 %v3147_v18, %v1415_v48  ;;  %v1539_v55 = vpop.xlane.xlu0 %1538  ;;  %v1976_v18 = vmul.f32 %v1701_v58, %v3122_v32 }
 0x276   :  { %v1595_v20 = vmul.f32 0.03125, %v1539_v55 }
 0x277   :  { %v1706_v59 = vsub.f32 1.5, %v1705_v36  ;;  %v3288_v46 = vsel %vm1427_vm0, %v1450_v52, 0.0  ;;  %v2008_v26 = vmax.f32 %v1976_v18, 0.0 }
 0x278   :  { %v2720_v4 = vpop.eup %2719  ;;  %v1627_v28 = vadd.f32 1e-05, %v1595_v20  ;;  %v1514_v33 = vmul.f32 %v3288_v46, %v3288_v46 }
 0x279   :  { %v1707_v56 = vmul.f32 %v2718_v37, %v1706_v59  ;;  %v1713_v43 = vmul.f32 %v2720_v4, %v1626_v49  ;;  %vm1719_vm4 = vweird.f32 %v2720_v4 }
 0x27a   :  { %2721 = vrsqrt.f32 %v1627_v28  ;;  %1568 = vadd.xlane.f32.xlu0 %v1514_v33  ;;  %v1376_v47 = vpop.xlane.xlu2 %1375  ;;  %vm1720_vm6 = vmor %vm1718_vm5, %vm1719_vm4  ;;  %vm1728_vm8 = vweird.f32 %v1627_v28 }
 0x27b   :  { %v1711_v63 = vsel %vm1710_vm3, %v2718_v37, %v1707_v56  ;;  %v1714_v9 = vmul.f32 %v2720_v4, %v1713_v43  ;;  %v1416_v17 = vmul.f32 0.03125, %v1376_v47 }
 0x27c   :  { %v1977_v15 = vmul.f32 %v1711_v63, %v3132_v38 }
 0x27d   :  { %v1715_v57 = vmul.f32 0.5, %v1714_v9  ;;  %v1451_v24 = vsub.f32 %v3157_v30, %v1416_v17  ;;  %v1541_v25 = vpop.xlane.xlu1 %1540 }
 0x27e   :  { %v2009_v29 = vmax.f32 %v1977_v15, 0.0  ;;  %v1596_v35 = vmul.f32 0.03125, %v1541_v25 }
 0x27f   :  { %v1716_v14 = vsub.f32 1.5, %v1715_v57  ;;  %v3297_v32 = vsel %vm1427_vm0, %v1451_v24, 0.0 }
 0x280   :  { %v2722_v5 = vpop.eup %2721  ;;  %v2599_v1 = vpack.c.bf16 %v2009_v29, %v2008_v26  ;;  %v1628_v3 = vadd.f32 1e-05, %v1596_v35  ;;  %v1515_v37 = vmul.f32 %v3297_v32, %v3297_v32 }
 0x281   :  { %v1723_v13 = vmul.f32 %v2722_v5, %v1627_v28  ;;  %v1717_v30 = vmul.f32 %v2720_v4, %v1716_v14  ;;  %vm1729_vm7 = vweird.f32 %v2722_v5 }
 0x282   :  { %2682 = vst [vmem:[#allocation14 + $0x10] sm:$0xff] %v2599_v1   ;;  %2723 = vrsqrt.f32 %v1628_v3  ;;  %1570 = vadd.xlane.f32.xlu1 %v1515_v37  ;;  %v1378_v38 = vpop.xlane.xlu0 %1377  ;;  %vm1730_vm9 = vmor %vm1728_vm8, %vm1729_vm7  ;;  %vm1738_vm11 = vweird.f32 %v1628_v3 }
 0x283   :  { %v1724_v0 = vmul.f32 %v2722_v5, %v1723_v13  ;;  %v1417_v19 = vmul.f32 0.03125, %v1378_v38  ;;  %v1721_v52 = vsel %vm1720_vm6, %v2720_v4, %v1717_v30 }
 0x285   :  { %v1725_v8 = vmul.f32 0.5, %v1724_v0  ;;  %v1452_v54 = vsub.f32 %v3167_v42, %v1417_v19  ;;  %v1543_v48 = vpop.xlane.xlu2 %1542  ;;  %v1978_v42 = vmul.f32 %v1721_v52, %v3142_v51 }
 0x286   :  { %v1597_v36 = vmul.f32 0.03125, %v1543_v48 }
 0x287   :  { %v1726_v55 = vsub.f32 1.5, %v1725_v8  ;;  %v3304_v20 = vsel %vm1427_vm0, %v1452_v54, 0.0  ;;  %v2010_v57 = vmax.f32 %v1978_v42, 0.0 }
 0x288   :  { %v2724_v58 = vpop.eup %2723  ;;  %v1629_v59 = vadd.f32 1e-05, %v1597_v36  ;;  %v1516_v33 = vmul.f32 %v3304_v20, %v3304_v20 }
 0x289   :  { %v1727_v56 = vmul.f32 %v2722_v5, %v1726_v55  ;;  %v1733_v49 = vmul.f32 %v2724_v58, %v1628_v3  ;;  %vm1739_vm10 = vweird.f32 %v2724_v58 }
 0x28a   :  { %2725 = vrsqrt.f32 %v1629_v59  ;;  %v1380_v43 = vpop.xlane.xlu1 %1379  ;;  %1572 = vadd.xlane.f32.xlu2 %v1516_v33  ;;  %vm1740_vm12 = vmor %vm1738_vm11, %vm1739_vm10  ;;  %vm1748_vm14 = vweird.f32 %v1629_v59 }
 0x28b   :  { %v1731_v4 = vsel %vm1730_vm9, %v2722_v5, %v1727_v56  ;;  %v1734_v18 = vmul.f32 %v2724_v58, %v1733_v49  ;;  %v1418_v47 = vmul.f32 0.03125, %v1380_v43 }
 0x28c   :  { %v1979_v63 = vmul.f32 %v1731_v4, %v3152_v22 }
 0x28d   :  { %v1735_v9 = vmul.f32 0.5, %v1734_v18  ;;  %v1453_v17 = vsub.f32 %v3177_v50, %v1418_v47  ;;  %v1545_v15 = vpop.xlane.xlu0 %1544 }
 0x28e   :  { %v2011_v24 = vmax.f32 %v1979_v63, 0.0  ;;  %v1598_v25 = vmul.f32 0.03125, %v1545_v15 }
 0x28f   :  { %v1736_v28 = vsub.f32 1.5, %v1735_v9  ;;  %v3313_v51 = vsel %vm1427_vm0, %v1453_v17, 0.0 }
 0x290   :  { %v2726_v26 = vpop.eup %2725  ;;  %v2604_v29 = vpack.c.bf16 %v2011_v24, %v2010_v57  ;;  %v1630_v35 = vadd.f32 1e-05, %v1598_v25  ;;  %v1517_v14 = vmul.f32 %v3313_v51, %v3313_v51 }
 0x291   :  { %v1743_v5 = vmul.f32 %v2726_v26, %v1629_v59  ;;  %v1737_v50 = vmul.f32 %v2724_v58, %v1736_v28  ;;  %vm1749_vm13 = vweird.f32 %v2726_v26 }
 0x292   :  { %2683 = vst [vmem:[#allocation14 + $0x18] sm:$0xff] %v2604_v29   ;;  %2727 = vrsqrt.f32 %v1630_v35  ;;  %1574 = vadd.xlane.f32.xlu0 %v1517_v14  ;;  %v1382_v22 = vpop.xlane.xlu2 %1381  ;;  %vm1750_vm15 = vmor %vm1748_vm14, %vm1749_vm13  ;;  %vm1758_vm2 = vweird.f32 %v1630_v35 }
 0x293   :  { %v1744_v1 = vmul.f32 %v2726_v26, %v1743_v5  ;;  %v1419_v37 = vmul.f32 0.03125, %v1382_v22  ;;  %v1741_v19 = vsel %vm1740_vm12, %v2724_v58, %v1737_v50 }
 0x295   :  { %v1745_v13 = vmul.f32 0.5, %v1744_v1  ;;  %v1454_v38 = vsub.f32 %v3187_v62, %v1419_v37  ;;  %v1547_v30 = vpop.xlane.xlu1 %1546  ;;  %v1980_v62 = vmul.f32 %v1741_v19, %v3162_v6 }
 0x296   :  { %v1599_v0 = vmul.f32 0.03125, %v1547_v30 }
 0x297   :  { %v1746_v8 = vsub.f32 1.5, %v1745_v13  ;;  %v3320_v54 = vsel %vm1427_vm0, %v1454_v38, 0.0  ;;  %v2012_v47 = vmax.f32 %v1980_v62, 0.0 }
 0x298   :  { %v2728_v48 = vpop.eup %2727  ;;  %v1631_v36 = vadd.f32 1e-05, %v1599_v0  ;;  %v1518_v52 = vmul.f32 %v3320_v54, %v3320_v54 }
 0x299   :  { %v1747_v55 = vmul.f32 %v2726_v26, %v1746_v8  ;;  %v1753_v3 = vmul.f32 %v2728_v48, %v1630_v35  ;;  %vm1759_vm1 = vweird.f32 %v2728_v48 }
 0x29a   :  { %2729 = vrsqrt.f32 %v1631_v36  ;;  %1576 = vadd.xlane.f32.xlu1 %v1518_v52  ;;  %v1384_v58 = vpop.xlane.xlu0 %1383  ;;  %vm1760_vm3 = vmor %vm1758_vm2, %vm1759_vm1  ;;  %vm1768_vm5 = vweird.f32 %v1631_v36 }
 0x29b   :  { %v1751_v33 = vsel %vm1750_vm15, %v2726_v26, %v1747_v55  ;;  %v1754_v56 = vmul.f32 %v2728_v48, %v1753_v3  ;;  %v1420_v49 = vmul.f32 0.03125, %v1384_v58 }
 0x29c   :  { %v1981_v42 = vmul.f32 %v1751_v33, %v3172_v12 }
 0x29d   :  { %v1755_v43 = vmul.f32 0.5, %v1754_v56  ;;  %v1455_v4 = vsub.f32 %v3197_v7, %v1420_v49  ;;  %v1549_v18 = vpop.xlane.xlu2 %1548 }
 0x29e   :  { %v2013_v63 = vmax.f32 %v1981_v42, 0.0  ;;  %v1600_v9 = vmul.f32 0.03125, %v1549_v18 }
 0x29f   :  { %v1756_v59 = vsub.f32 1.5, %v1755_v43  ;;  %v3329_v6 = vsel %vm1427_vm0, %v1455_v4, 0.0 }
 0x2a0   :  { %v2730_v17 = vpop.eup %2729  ;;  %v2609_v15 = vpack.c.bf16 %v2013_v63, %v2012_v47  ;;  %v1632_v57 = vadd.f32 1e-05, %v1600_v9  ;;  %v1519_v24 = vmul.f32 %v3329_v6, %v3329_v6 }
 0x2a1   :  { %v1763_v25 = vmul.f32 %v2730_v17, %v1631_v36  ;;  %v1757_v7 = vmul.f32 %v2728_v48, %v1756_v59  ;;  %vm1769_vm4 = vweird.f32 %v2730_v17 }
 0x2a2   :  { %2684 = vst [vmem:[#allocation14 + $0x20] sm:$0xff] %v2609_v15   ;;  %2731 = vrsqrt.f32 %v1632_v57  ;;  %v1386_v12 = vpop.xlane.xlu1 %1385  ;;  %1578 = vadd.xlane.f32.xlu2 %v1519_v24  ;;  %vm1770_vm6 = vmor %vm1768_vm5, %vm1769_vm4  ;;  %vm1778_vm8 = vweird.f32 %v1632_v57 }
 0x2a3   :  { %v1764_v28 = vmul.f32 %v2730_v17, %v1763_v25  ;;  %v1421_v26 = vmul.f32 0.03125, %v1386_v12  ;;  %v1761_v50 = vsel %vm1760_vm3, %v2728_v48, %v1757_v7 }
 0x2a5   :  { %v1765_v29 = vmul.f32 0.5, %v1764_v28  ;;  %v1456_v14 = vsub.f32 %v3207_v23, %v1421_v26  ;;  %v1551_v5 = vpop.xlane.xlu0 %1550  ;;  %v1982_v23 = vmul.f32 %v1761_v50, %v3182_v27 }
 0x2a6   :  { %v1601_v22 = vmul.f32 0.03125, %v1551_v5 }
 0x2a7   :  { %v1766_v1 = vsub.f32 1.5, %v1765_v29  ;;  %v3336_v37 = vsel %vm1427_vm0, %v1456_v14, 0.0  ;;  %v2014_v58 = vmax.f32 %v1982_v23, 0.0 }
 0x2a8   :  { %v2732_v13 = vpop.eup %2731  ;;  %v1633_v38 = vadd.f32 1e-05, %v1601_v22  ;;  %v1520_v30 = vmul.f32 %v3336_v37, %v3336_v37 }
 0x2a9   :  { %v1767_v0 = vmul.f32 %v2730_v17, %v1766_v1  ;;  %v1773_v35 = vmul.f32 %v2732_v13, %v1632_v57  ;;  %vm1779_vm7 = vweird.f32 %v2732_v13 }
 0x2aa   :  { %2733 = vrsqrt.f32 %v1633_v38  ;;  %1580 = vadd.xlane.f32.xlu0 %v1520_v30  ;;  %v1388_v19 = vpop.xlane.xlu2 %1387  ;;  %vm1780_vm9 = vmor %vm1778_vm8, %vm1779_vm7  ;;  %vm1788_vm11 = vweird.f32 %v1633_v38 }
 0x2ab   :  { %v1771_v8 = vsel %vm1770_vm6, %v2730_v17, %v1767_v0  ;;  %v1774_v48 = vmul.f32 %v2732_v13, %v1773_v35  ;;  %v1422_v52 = vmul.f32 0.03125, %v1388_v19 }
 0x2ac   :  { %v1983_v55 = vmul.f32 %v1771_v8, %v3192_v34 }
 0x2ad   :  { %v1775_v3 = vmul.f32 0.5, %v1774_v48  ;;  %v1457_v62 = vsub.f32 %v3216_v31, %v1422_v52 }
 0x2ae   :  { %v2015_v33 = vmax.f32 %v1983_v55, 0.0 }
 0x2af   :  { %v1776_v56 = vsub.f32 1.5, %v1775_v3  ;;  %v3345_v36 = vsel %vm1427_vm0, %v1457_v62, 0.0 }
 0x2b0   :  { %v2734_v27 = vpop.eup %2733  ;;  %v2614_v49 = vpack.c.bf16 %v2015_v33, %v2014_v58  ;;  %v1521_v42 = vmul.f32 %v3345_v36, %v3345_v36 }
 0x2b1   :  { %v1783_v43 = vmul.f32 %v2734_v27, %v1633_v38  ;;  %v1777_v34 = vmul.f32 %v2732_v13, %v1776_v56  ;;  %vm1789_vm10 = vweird.f32 %v2734_v27 }
 0x2b2   :  { %2685 = vst [vmem:[#allocation14 + $0x28] sm:$0xff] %v2614_v49   ;;  %1582 = vadd.xlane.f32.xlu1 %v1521_v42  ;;  %v1390_v4 = vpop.xlane.xlu0 %1389  ;;  %vm1790_vm12 = vmor %vm1788_vm11, %vm1789_vm10 }
 0x2b3   :  { %v1784_v18 = vmul.f32 %v2734_v27, %v1783_v43  ;;  %v1423_v31 = vmul.f32 0.03125, %v1390_v4  ;;  %v1781_v17 = vsel %vm1780_vm9, %v2732_v13, %v1777_v34 }
 0x2b4   :  { %v1984_v57 = vmul.f32 %v1781_v17, %v3202_v11 }
 0x2b5   :  { %v1785_v47 = vmul.f32 0.5, %v1784_v18  ;;  %v1458_v63 = vsub.f32 %v3220_v41, %v1423_v31  ;;  %v1555_v9 = vpop.xlane.xlu2 %1554 }
 0x2b6   :  { %v1603_v59 = vmul.f32 0.03125, %v1555_v9  ;;  %v2016_v22 = vmax.f32 %v1984_v57, 0.0 }
 0x2b7   :  { %v1786_v15 = vsub.f32 1.5, %v1785_v47  ;;  %v3352_v24 = vsel %vm1427_vm0, %v1458_v63, 0.0 }
 0x2b8   :  { %v1635_v25 = vadd.f32 1e-05, %v1603_v59  ;;  %v1522_v12 = vmul.f32 %v3352_v24, %v3352_v24 }
 0x2b9   :  { %v1787_v7 = vmul.f32 %v2734_v27, %v1786_v15 }
 0x2ba   :  { %2735 = vrsqrt.f32 %v1635_v25  ;;  %v1392_v41 = vpop.xlane.xlu1 %1391  ;;  %1584 = vadd.xlane.f32.xlu2 %v1522_v12  ;;  %vm1808_vm13 = vweird.f32 %v1635_v25 }
 0x2bb   :  { %v1791_v28 = vsel %vm1790_vm12, %v2734_v27, %v1787_v7  ;;  %v1424_v26 = vmul.f32 0.03125, %v1392_v41 }
 0x2bc   :  { %v1985_v29 = vmul.f32 %v1791_v28, %v3212_v53 }
 0x2bd   :  { %v1459_v14 = vsub.f32 %v3230_v60, %v1424_v26  ;;  %v1557_v5 = vpop.xlane.xlu0 %1556 }
 0x2be   :  { %v2017_v50 = vmax.f32 %v1985_v29, 0.0  ;;  %v1604_v1 = vmul.f32 0.03125, %v1557_v5 }
 0x2bf   :  { %v3361_v13 = vsel %vm1427_vm0, %v1459_v14, 0.0 }
 0x2c0   :  { %v2736_v38 = vpop.eup %2735  ;;  %v2619_v11 = vpack.c.bf16 %v2017_v50, %v2016_v22  ;;  %v1636_v30 = vadd.f32 1e-05, %v1604_v1  ;;  %v1523_v0 = vmul.f32 %v3361_v13, %v3361_v13 }
 0x2c1   :  { %v1803_v35 = vmul.f32 %v2736_v38, %v1635_v25  ;;  %vm1809_vm0 = vweird.f32 %v2736_v38 }
 0x2c2   :  { %2686 = vst [vmem:[#allocation14 + $0x30] sm:$0xff] %v2619_v11   ;;  %2737 = vrsqrt.f32 %v1636_v30  ;;  %v1553_v53 = vpop.xlane.xlu1 %1552  ;;  %1586 = vadd.xlane.f32.xlu0 %v1523_v0  ;;  %vm1810_vm14 = vmor %vm1808_vm13, %vm1809_vm0  ;;  %vm1818_vm4 = vweird.f32 %v1636_v30 }
 0x2c3   :  { %v1602_v60 = vmul.f32 0.03125, %v1553_v53  ;;  %v1804_v23 = vmul.f32 %v2736_v38, %v1803_v35 }
 0x2c5   :  { %v1634_v19 = vadd.f32 1e-05, %v1602_v60  ;;  %v1805_v48 = vmul.f32 0.5, %v1804_v23 }
 0x2c7   :  { %2739 = vrsqrt.f32 %v1634_v19  ;;  %v1806_v3 = vsub.f32 1.5, %v1805_v48  ;;  %vm1798_vm1 = vweird.f32 %v1634_v19 }
 0x2c8   :  { %v2738_v8 = vpop.eup %2737 }
 0x2c9   :  { %v1813_v10 = vmul.f32 %v2738_v8, %v1636_v30  ;;  %v1807_v42 = vmul.f32 %v2736_v38, %v1806_v3  ;;  %vm1819_vm3 = vweird.f32 %v2738_v8 }
 0x2ca   :  { %v1559_v52 = vpop.xlane.xlu1 %1558  ;;  %vm1820_vm5 = vmor %vm1818_vm4, %vm1819_vm3 }
 0x2cb   :  { %v1605_v55 = vmul.f32 0.03125, %v1559_v52  ;;  %v1814_v62 = vmul.f32 %v2738_v8, %v1813_v10  ;;  %v1811_v31 = vsel %vm1810_vm14, %v2736_v38, %v1807_v42 }
 0x2cc   :  { %v1987_v12 = vmul.f32 %v1811_v31, %v3225_v45 }
 0x2cd   :  { %v2740_v58 = vpop.eup %2739  ;;  %v1637_v33 = vadd.f32 1e-05, %v1605_v55  ;;  %v1561_v56 = vpop.xlane.xlu2 %1560  ;;  %v1815_v43 = vmul.f32 0.5, %v1814_v62 }
 0x2ce   :  { %v1793_v27 = vmul.f32 %v2740_v58, %v1634_v19  ;;  %v1606_v49 = vmul.f32 0.03125, %v1561_v56  ;;  %vm1799_vm15 = vweird.f32 %v2740_v58  ;;  %v2019_v22 = vmax.f32 %v1987_v12, 0.0 }
 0x2cf   :  { %2741 = vrsqrt.f32 %v1637_v33  ;;  %v1816_v47 = vsub.f32 1.5, %v1815_v43  ;;  %vm1800_vm2 = vmor %vm1798_vm1, %vm1799_vm15  ;;  %vm1828_vm7 = vweird.f32 %v1637_v33 }
 0x2d0   :  { %v1794_v4 = vmul.f32 %v2740_v58, %v1793_v27  ;;  %v1638_v34 = vadd.f32 1e-05, %v1606_v49 }
 0x2d1   :  { %v1817_v41 = vmul.f32 %v2738_v8, %v1816_v47 }
 0x2d2   :  { %v1795_v18 = vmul.f32 0.5, %v1794_v4  ;;  %2743 = vrsqrt.f32 %v1638_v34  ;;  %vm1838_vm10 = vweird.f32 %v1638_v34 }
 0x2d3   :  { %v1821_v38 = vsel %vm1820_vm5, %v2738_v8, %v1817_v41 }
 0x2d4   :  { %v1796_v63 = vsub.f32 1.5, %v1795_v18 }
 0x2d5   :  { %v2742_v9 = vpop.eup %2741  ;;  %v1563_v59 = vpop.xlane.xlu0 %1562 }
 0x2d6   :  { %v1797_v17 = vmul.f32 %v2740_v58, %v1796_v63  ;;  %v1823_v15 = vmul.f32 %v2742_v9, %v1637_v33  ;;  %v1607_v7 = vmul.f32 0.03125, %v1563_v59  ;;  %vm1829_vm6 = vweird.f32 %v2742_v9 }
 0x2d7   :  { %vm1830_vm8 = vmor %vm1828_vm7, %vm1829_vm6 }
 0x2d8   :  { %v2744_v57 = vpop.eup %2743  ;;  %v1801_v25 = vsel %vm1800_vm2, %v2740_v58, %v1797_v17  ;;  %v1824_v28 = vmul.f32 %v2742_v9, %v1823_v15  ;;  %v1639_v14 = vadd.f32 1e-05, %v1607_v7 }
 0x2d9   :  { %v1986_v26 = vmul.f32 %v1801_v25, %v3242_v16  ;;  %v1833_v29 = vmul.f32 %v2744_v57, %v1638_v34  ;;  %v1988_v16 = vmul.f32 %v1821_v38, %v3236_v2  ;;  %vm1839_vm9 = vweird.f32 %v2744_v57 }
 0x2da   :  { %v1825_v5 = vmul.f32 0.5, %v1824_v28  ;;  %2745 = vrsqrt.f32 %v1639_v14  ;;  %vm1840_vm11 = vmor %vm1838_vm10, %vm1839_vm9  ;;  %vm1848_vm0 = vweird.f32 %v1639_v14 }
 0x2db   :  { %v2018_v50 = vmax.f32 %v1986_v26, 0.0  ;;  %v1834_v1 = vmul.f32 %v2744_v57, %v1833_v29  ;;  %v2020_v8 = vmax.f32 %v1988_v16, 0.0 }
 0x2dc   :  { %v1826_v45 = vsub.f32 1.5, %v1825_v5 }
 0x2dd   :  { %v2624_v11 = vpack.c.bf16 %v2019_v22, %v2018_v50  ;;  %v1835_v0 = vmul.f32 0.5, %v1834_v1  ;;  %v1565_v35 = vpop.xlane.xlu1 %1564 }
 0x2de   :  { %v1827_v53 = vmul.f32 %v2742_v9, %v1826_v45  ;;  %v1608_v60 = vmul.f32 0.03125, %v1565_v35 }
 0x2df   :  { %2687 = vst [vmem:[#allocation14 + $0x38] sm:$0xff] %v2624_v11   ;;  %v1836_v23 = vsub.f32 1.5, %v1835_v0 }
 0x2e0   :  { %v1831_v30 = vsel %vm1830_vm8, %v2742_v9, %v1827_v53  ;;  %v1640_v19 = vadd.f32 1e-05, %v1608_v60  ;;  %v2746_v48 = vpop.eup %2745 }
 0x2e1   :  { %v1989_v10 = vmul.f32 %v1831_v30, %v3249_v40  ;;  %v1843_v52 = vmul.f32 %v2746_v48, %v1639_v14  ;;  %v1837_v3 = vmul.f32 %v2744_v57, %v1836_v23  ;;  %vm1849_vm12 = vweird.f32 %v2746_v48 }
 0x2e2   :  { %2747 = vrsqrt.f32 %v1640_v19  ;;  %vm1850_vm13 = vmor %vm1848_vm0, %vm1849_vm12  ;;  %vm1858_vm15 = vweird.f32 %v1640_v19 }
 0x2e3   :  { %v2021_v55 = vmax.f32 %v1989_v10, 0.0  ;;  %v1844_v62 = vmul.f32 %v2746_v48, %v1843_v52  ;;  %v1841_v49 = vsel %vm1840_vm11, %v2744_v57, %v1837_v3 }
 0x2e4   :  { %v1990_v18 = vmul.f32 %v1841_v49, %v3256_v61 }
 0x2e5   :  { %v2629_v58 = vpack.c.bf16 %v2021_v55, %v2020_v8  ;;  %v1567_v33 = vpop.xlane.xlu2 %1566  ;;  %v1845_v56 = vmul.f32 0.5, %v1844_v62 }
 0x2e6   :  { %v1609_v2 = vmul.f32 0.03125, %v1567_v33  ;;  %v2022_v17 = vmax.f32 %v1990_v18, 0.0 }
 0x2e7   :  { %2688 = vst [vmem:[#allocation14 + $0x40] sm:$0xff] %v2629_v58   ;;  %v1846_v42 = vsub.f32 1.5, %v1845_v56 }
 0x2e8   :  { %v2748_v27 = vpop.eup %2747  ;;  %v1641_v43 = vadd.f32 1e-05, %v1609_v2 }
 0x2e9   :  { %v1853_v40 = vmul.f32 %v2748_v27, %v1640_v19  ;;  %v1847_v4 = vmul.f32 %v2746_v48, %v1846_v42  ;;  %vm1859_vm14 = vweird.f32 %v2748_v27 }
 0x2ea   :  { %2749 = vrsqrt.f32 %v1641_v43  ;;  %vm1860_vm1 = vmor %vm1858_vm15, %vm1859_vm14  ;;  %vm1868_vm3 = vweird.f32 %v1641_v43 }
 0x2eb   :  { %v1854_v31 = vmul.f32 %v2748_v27, %v1853_v40  ;;  %v1851_v47 = vsel %vm1850_vm13, %v2746_v48, %v1847_v4 }
 0x2ec   :  { %v1991_v34 = vmul.f32 %v1851_v47, %v3265_v21 }
 0x2ed   :  { %v1855_v63 = vmul.f32 0.5, %v1854_v31  ;;  %v1569_v9 = vpop.xlane.xlu0 %1568 }
 0x2ee   :  { %v1610_v59 = vmul.f32 0.03125, %v1569_v9  ;;  %v2023_v15 = vmax.f32 %v1991_v34, 0.0 }
 0x2ef   :  { %v1856_v12 = vsub.f32 1.5, %v1855_v63 }
 0x2f0   :  { %v2750_v7 = vpop.eup %2749  ;;  %v1642_v57 = vadd.f32 1e-05, %v1610_v59  ;;  %v2634_v41 = vpack.c.bf16 %v2023_v15, %v2022_v17 }
 0x2f1   :  { %v1863_v25 = vmul.f32 %v2750_v7, %v1641_v43  ;;  %v1857_v28 = vmul.f32 %v2748_v27, %v1856_v12  ;;  %vm1869_vm2 = vweird.f32 %v2750_v7 }
 0x2f2   :  { %2751 = vrsqrt.f32 %v1642_v57  ;;  %2689 = vst [vmem:[#allocation14 + $0x48] sm:$0xff] %v2634_v41   ;;  %vm1870_vm4 = vmor %vm1868_vm3, %vm1869_vm2  ;;  %vm1878_vm6 = vweird.f32 %v1642_v57 }
 0x2f3   :  { %v1864_v61 = vmul.f32 %v2750_v7, %v1863_v25  ;;  %v1861_v14 = vsel %vm1860_vm1, %v2748_v27, %v1857_v28 }
 0x2f4   :  { %v1992_v45 = vmul.f32 %v1861_v14, %v3272_v44 }
 0x2f5   :  { %v1865_v26 = vmul.f32 0.5, %v1864_v61  ;;  %v1571_v29 = vpop.xlane.xlu1 %1570 }
 0x2f6   :  { %v1611_v21 = vmul.f32 0.03125, %v1571_v29  ;;  %v2024_v16 = vmax.f32 %v1992_v45, 0.0 }
 0x2f7   :  { %v1866_v5 = vsub.f32 1.5, %v1865_v26 }
 0x2f8   :  { %v2752_v22 = vpop.eup %2751  ;;  %v1643_v50 = vadd.f32 1e-05, %v1611_v21 }
 0x2f9   :  { %v1867_v1 = vmul.f32 %v2750_v7, %v1866_v5  ;;  %v1873_v38 = vmul.f32 %v2752_v22, %v1642_v57  ;;  %vm1879_vm5 = vweird.f32 %v2752_v22 }
 0x2fa   :  { %2753 = vrsqrt.f32 %v1643_v50  ;;  %vm1880_vm7 = vmor %vm1878_vm6, %vm1879_vm5  ;;  %vm1888_vm9 = vweird.f32 %v1643_v50 }
 0x2fb   :  { %v1871_v11 = vsel %vm1870_vm4, %v2750_v7, %v1867_v1  ;;  %v1874_v0 = vmul.f32 %v2752_v22, %v1873_v38 }
 0x2fc   :  { %v1993_v35 = vmul.f32 %v1871_v11, %v3281_v39 }
 0x2fd   :  { %v1875_v53 = vmul.f32 0.5, %v1874_v0  ;;  %v1573_v60 = vpop.xlane.xlu2 %1572 }
 0x2fe   :  { %v2025_v30 = vmax.f32 %v1993_v35, 0.0  ;;  %v1612_v23 = vmul.f32 0.03125, %v1573_v60 }
 0x2ff   :  { %v1876_v19 = vsub.f32 1.5, %v1875_v53 }
 0x300   :  { %v2754_v48 = vpop.eup %2753  ;;  %v2639_v10 = vpack.c.bf16 %v2025_v30, %v2024_v16  ;;  %v1644_v52 = vadd.f32 1e-05, %v1612_v23 }
 0x301   :  { %v1883_v8 = vmul.f32 %v2754_v48, %v1643_v50  ;;  %v1877_v55 = vmul.f32 %v2752_v22, %v1876_v19  ;;  %vm1889_vm8 = vweird.f32 %v2754_v48 }
 0x302   :  { %2690 = vst [vmem:[#allocation14 + $0x50] sm:$0xff] %v2639_v10   ;;  %2755 = vrsqrt.f32 %v1644_v52  ;;  %vm1890_vm10 = vmor %vm1888_vm9, %vm1889_vm8  ;;  %vm1898_vm12 = vweird.f32 %v1644_v52 }
 0x303   :  { %v1884_v44 = vmul.f32 %v2754_v48, %v1883_v8  ;;  %v1881_v58 = vsel %vm1880_vm7, %v2752_v22, %v1877_v55 }
 0x304   :  { %v1994_v42 = vmul.f32 %v1881_v58, %v3288_v46 }
 0x305   :  { %v1885_v3 = vmul.f32 0.5, %v1884_v44  ;;  %v1575_v62 = vpop.xlane.xlu0 %1574 }
 0x306   :  { %v1613_v39 = vmul.f32 0.03125, %v1575_v62  ;;  %v2026_v47 = vmax.f32 %v1994_v42, 0.0 }
 0x307   :  { %v1886_v33 = vsub.f32 1.5, %v1885_v3 }
 0x308   :  { %v2756_v56 = vpop.eup %2755  ;;  %v1645_v2 = vadd.f32 1e-05, %v1613_v39 }
 0x309   :  { %v1887_v27 = vmul.f32 %v2754_v48, %v1886_v33  ;;  %v1893_v49 = vmul.f32 %v2756_v56, %v1644_v52  ;;  %vm1899_vm11 = vweird.f32 %v2756_v56 }
 0x30a   :  { %2757 = vrsqrt.f32 %v1645_v2  ;;  %vm1900_vm0 = vmor %vm1898_vm12, %vm1899_vm11  ;;  %vm1908_vm14 = vweird.f32 %v1645_v2 }
 0x30b   :  { %v1891_v43 = vsel %vm1890_vm10, %v2754_v48, %v1887_v27  ;;  %v1894_v40 = vmul.f32 %v2756_v56, %v1893_v49 }
 0x30c   :  { %v1995_v4 = vmul.f32 %v1891_v43, %v3297_v32 }
 0x30d   :  { %v1895_v18 = vmul.f32 0.5, %v1894_v40  ;;  %v1577_v31 = vpop.xlane.xlu1 %1576 }
 0x30e   :  { %v2027_v34 = vmax.f32 %v1995_v4, 0.0  ;;  %v1614_v63 = vmul.f32 0.03125, %v1577_v31 }
 0x30f   :  { %v1896_v9 = vsub.f32 1.5, %v1895_v18 }
 0x310   :  { %v2758_v59 = vpop.eup %2757  ;;  %v2644_v17 = vpack.c.bf16 %v2027_v34, %v2026_v47  ;;  %v1646_v15 = vadd.f32 1e-05, %v1614_v63 }
 0x311   :  { %v1903_v12 = vmul.f32 %v2758_v59, %v1645_v2  ;;  %v1897_v7 = vmul.f32 %v2756_v56, %v1896_v9  ;;  %vm1909_vm13 = vweird.f32 %v2758_v59 }
 0x312   :  { %2691 = vst [vmem:[#allocation14 + $0x58] sm:$0xff] %v2644_v17   ;;  %2759 = vrsqrt.f32 %v1646_v15  ;;  %vm1910_vm15 = vmor %vm1908_vm14, %vm1909_vm13  ;;  %vm1918_vm2 = vweird.f32 %v1646_v15 }
 0x313   :  { %v1904_v46 = vmul.f32 %v2758_v59, %v1903_v12  ;;  %v1901_v25 = vsel %vm1900_vm0, %v2756_v56, %v1897_v7 }
 0x314   :  { %v1996_v14 = vmul.f32 %v1901_v25, %v3304_v20 }
 0x315   :  { %v1905_v57 = vmul.f32 0.5, %v1904_v46  ;;  %v1579_v41 = vpop.xlane.xlu2 %1578 }
 0x316   :  { %v1615_v32 = vmul.f32 0.03125, %v1579_v41  ;;  %v2028_v45 = vmax.f32 %v1996_v14, 0.0 }
 0x317   :  { %v1906_v28 = vsub.f32 1.5, %v1905_v57 }
 0x318   :  { %v2760_v61 = vpop.eup %2759  ;;  %v1647_v26 = vadd.f32 1e-05, %v1615_v32 }
 0x319   :  { %v1907_v29 = vmul.f32 %v2758_v59, %v1906_v28  ;;  %v1913_v21 = vmul.f32 %v2760_v61, %v1646_v15  ;;  %vm1919_vm1 = vweird.f32 %v2760_v61 }
 0x31a   :  { %2761 = vrsqrt.f32 %v1647_v26  ;;  %vm1920_vm3 = vmor %vm1918_vm2, %vm1919_vm1  ;;  %vm1928_vm5 = vweird.f32 %v1647_v26 }
 0x31b   :  { %v1911_v5 = vsel %vm1910_vm15, %v2758_v59, %v1907_v29  ;;  %v1914_v22 = vmul.f32 %v2760_v61, %v1913_v21 }
 0x31c   :  { %v1997_v50 = vmul.f32 %v1911_v5, %v3313_v51 }
 0x31d   :  { %v1915_v1 = vmul.f32 0.5, %v1914_v22  ;;  %v1581_v38 = vpop.xlane.xlu0 %1580 }
 0x31e   :  { %v2029_v11 = vmax.f32 %v1997_v50, 0.0  ;;  %v1616_v0 = vmul.f32 0.03125, %v1581_v38 }
 0x31f   :  { %v1916_v35 = vsub.f32 1.5, %v1915_v1 }
 0x320   :  { %v2762_v53 = vpop.eup %2761  ;;  %v2649_v60 = vpack.c.bf16 %v2029_v11, %v2028_v45  ;;  %v1648_v16 = vadd.f32 1e-05, %v1616_v0 }
 0x321   :  { %v1923_v30 = vmul.f32 %v2762_v53, %v1647_v26  ;;  %v1917_v23 = vmul.f32 %v2760_v61, %v1916_v35  ;;  %vm1929_vm4 = vweird.f32 %v2762_v53 }
 0x322   :  { %2692 = vst [vmem:[#allocation14 + $0x60] sm:$0xff] %v2649_v60   ;;  %2763 = vrsqrt.f32 %v1648_v16  ;;  %vm1930_vm6 = vmor %vm1928_vm5, %vm1929_vm4  ;;  %vm1938_vm8 = vweird.f32 %v1648_v16 }
 0x323   :  { %v1924_v20 = vmul.f32 %v2762_v53, %v1923_v30  ;;  %v1921_v10 = vsel %vm1920_vm3, %v2760_v61, %v1917_v23 }
 0x324   :  { %v1998_v62 = vmul.f32 %v1921_v10, %v3320_v54 }
 0x325   :  { %v1925_v19 = vmul.f32 0.5, %v1924_v20  ;;  %v1583_v48 = vpop.xlane.xlu1 %1582 }
 0x326   :  { %v1617_v51 = vmul.f32 0.03125, %v1583_v48  ;;  %v2030_v27 = vmax.f32 %v1998_v62, 0.0 }
 0x327   :  { %v1926_v52 = vsub.f32 1.5, %v1925_v19 }
 0x328   :  { %v2764_v8 = vpop.eup %2763  ;;  %v1649_v55 = vadd.f32 1e-05, %v1617_v51 }
 0x329   :  { %v1927_v44 = vmul.f32 %v2762_v53, %v1926_v52  ;;  %v1933_v3 = vmul.f32 %v2764_v8, %v1648_v16  ;;  %vm1939_vm7 = vweird.f32 %v2764_v8 }
 0x32a   :  { %2765 = vrsqrt.f32 %v1649_v55  ;;  %vm1940_vm9 = vmor %vm1938_vm8, %vm1939_vm7  ;;  %vm1948_vm11 = vweird.f32 %v1649_v55 }
 0x32b   :  { %v1931_v39 = vsel %vm1930_vm6, %v2762_v53, %v1927_v44  ;;  %v1934_v58 = vmul.f32 %v2764_v8, %v1933_v3 }
 0x32c   :  { %v1999_v33 = vmul.f32 %v1931_v39, %v3329_v6 }
 0x32d   :  { %v1935_v56 = vmul.f32 0.5, %v1934_v58  ;;  %v1585_v2 = vpop.xlane.xlu2 %1584 }
 0x32e   :  { %v2031_v49 = vmax.f32 %v1999_v33, 0.0  ;;  %v1618_v42 = vmul.f32 0.03125, %v1585_v2 }
 0x32f   :  { %v1936_v43 = vsub.f32 1.5, %v1935_v56 }
 0x330   :  { %v2766_v40 = vpop.eup %2765  ;;  %v2654_v4 = vpack.c.bf16 %v2031_v49, %v2030_v27  ;;  %v1650_v18 = vadd.f32 1e-05, %v1618_v42 }
 0x331   :  { %v1943_v31 = vmul.f32 %v2766_v40, %v1649_v55  ;;  %v1937_v47 = vmul.f32 %v2764_v8, %v1936_v43  ;;  %vm1949_vm10 = vweird.f32 %v2766_v40 }
 0x332   :  { %2693 = vst [vmem:[#allocation14 + $0x68] sm:$0xff] %v2654_v4   ;;  %2767 = vrsqrt.f32 %v1650_v18  ;;  %vm1950_vm12 = vmor %vm1948_vm11, %vm1949_vm10  ;;  %vm1958_vm13 = vweird.f32 %v1650_v18 }
 0x333   :  { %v1944_v54 = vmul.f32 %v2766_v40, %v1943_v31  ;;  %v1941_v9 = vsel %vm1940_vm9, %v2764_v8, %v1937_v47 }
 0x334   :  { %v2000_v46 = vmul.f32 %v1941_v9, %v3336_v37 }
 0x335   :  { %v1945_v34 = vmul.f32 0.5, %v1944_v54  ;;  %v1587_v63 = vpop.xlane.xlu0 %1586 }
 0x336   :  { %v1619_v6 = vmul.f32 0.03125, %v1587_v63  ;;  %v2032_v28 = vmax.f32 %v2000_v46, 0.0 }
 0x337   :  { %v1946_v59 = vsub.f32 1.5, %v1945_v34 }
 0x338   :  { %v2768_v17 = vpop.eup %2767  ;;  %v1651_v15 = vadd.f32 1e-05, %v1619_v6 }
 0x339   :  { %v1947_v12 = vmul.f32 %v2766_v40, %v1946_v59  ;;  %v1953_v7 = vmul.f32 %v2768_v17, %v1650_v18  ;;  %vm1959_vm0 = vweird.f32 %v2768_v17 }
 0x33a   :  { %2769 = vrsqrt.f32 %v1651_v15  ;;  %vm1960_vm14 = vmor %vm1958_vm13, %vm1959_vm0  ;;  %vm1968_vm1 = vweird.f32 %v1651_v15 }
 0x33b   :  { %v1951_v57 = vsel %vm1950_vm12, %v2766_v40, %v1947_v12  ;;  %v1954_v41 = vmul.f32 %v2768_v17, %v1953_v7 }
 0x33c   :  { %v2001_v32 = vmul.f32 %v1951_v57, %v3345_v36 }
 0x33d   :  { %v1955_v25 = vmul.f32 0.5, %v1954_v41 }
 0x33e   :  { %v2033_v61 = vmax.f32 %v2001_v32, 0.0 }
 0x33f   :  { %v1956_v26 = vsub.f32 1.5, %v1955_v25 }
 0x340   :  { %v2770_v29 = vpop.eup %2769  ;;  %v2659_v21 = vpack.c.bf16 %v2033_v61, %v2032_v28 }
 0x341   :  { %v1963_v14 = vmul.f32 %v2770_v29, %v1651_v15  ;;  %v1957_v5 = vmul.f32 %v2768_v17, %v1956_v26  ;;  %vm1969_vm15 = vweird.f32 %v2770_v29 }
 0x342   :  { %2694 = vst [vmem:[#allocation14 + $0x70] sm:$0xff] %v2659_v21   ;;  %vm1970_vm2 = vmor %vm1968_vm1, %vm1969_vm15 }
 0x343   :  { %v1964_v22 = vmul.f32 %v2770_v29, %v1963_v14  ;;  %v1961_v37 = vsel %vm1960_vm14, %v2768_v17, %v1957_v5 }
 0x344   :  { %v2002_v36 = vmul.f32 %v1961_v37, %v3352_v24 }
 0x345   :  { %v1965_v50 = vmul.f32 0.5, %v1964_v22 }
 0x346   :  { %v2034_v0 = vmax.f32 %v2002_v36, 0.0 }
 0x347   :  { %v1966_v1 = vsub.f32 1.5, %v1965_v50 }
 0x349   :  { %v1967_v38 = vmul.f32 %v2770_v29, %v1966_v1 }
 0x34b   :  { %v1971_v45 = vsel %vm1970_vm2, %v2770_v29, %v1967_v38 }
 0x34c   :  { %v2003_v11 = vmul.f32 %v1971_v45, %v3361_v13 }
 0x34e   :  { %v2035_v35 = vmax.f32 %v2003_v11, 0.0 }
 0x350   :  { %v2664_v53 = vpack.c.bf16 %v2035_v35, %v2034_v0 }
 0x352   :  { %2695 = vst [vmem:[#allocation14 + $0x78] sm:$0xff] %v2664_v53  }
 0x353   :  { %2112 = dma.vmem_to_hbm [thread:$0]  %s2105_s26, 2048, %s2107_s7, [#allocation5], %s2950_s29, %s2950_s29, %s2951_s30  }
 0x354   :  { %2947 = dma.done.wait [#allocation5], 2048  }
 0x355   :  { %2948 = vsyncadd [#allocation5], 4294965248 }
 0x356   :  { %2117 = vsyncpa [#allocation4], 1 }
 0x357   :  { %2118 = vsyncpa [#allocation7], 1 }
 0x358   :  { %2119 = vsyncpa [#allocation10], 1 }
 0x359   :  { %2120 = vsyncpa [#allocation13], 1 }
 0x35a   :  { %2121 = vsyncpa [#allocation5], 1 }

</bundles_post_ra>
